<compile_context>
chip_gen: v7x
topology: tpu7x:2x2x1
jax: 0.10.0
libtpu: 0.0.40
codegen_flags: <defaults>
</compile_context>

<pallas_src>
import jax
import jax.numpy as jnp
from jax.experimental import pallas as pl
from jax.experimental.pallas import tpu as pltpu

B = 8                              # small demo batch (shows IMG=4 lane-packing, grid=(2,))
H = W = 28                         # spatial size implied by fc_layers: 8 * 14 * 14
C_OUT = 8
KH = KW = 3
POOL_H = POOL_W = 14
FC_IN = C_OUT * POOL_H * POOL_W    # 1568
FC_OUT = 10

CH = C_OUT * H                     # 224  (channel-stacked conv columns: c*28 + i)
CP = C_OUT * POOL_H                # 112  (channel-stacked pooled columns: c*14 + ph)
KDIM = KW * (H + 2)                # 90   (fused conv contraction: dx*30 + r)
PWO = POOL_W * FC_OUT              # 140  (lane-expanded FC width: pw*10 + o)


def simplenet_kernel(x_ref, w_ref, brow_ref, rsel_ref, csel_ref,
                     w3_ref, mask_ref, ssel_ref, g_ref, bfc_ref, o_ref):
    # x_ref:    [1, IMG*28, 90]   bf16  dx-shifted image stack (rows = img*28+j, cols = dx*30+r)
    # w_ref:    [90, 224]         bf16  banded conv weights   (cols = c*28+i)
    # brow_ref: [1, 224]          f32   conv bias per output column
    # rsel_ref: [2, IMG*14, IMG*28] bf16 even/odd row (j) pool selectors
    # csel_ref: [2, 224, 112]     bf16  even/odd col (i) pool selectors
    # w3_ref:   [112, 140]        bf16  FC weight laid out as [c*14+ph, pw*10+o]
    # mask_ref: [IMG*14, 140]     f32   block-diagonal pw mask
    # ssel_ref: [IMG, IMG*14]     f32   per-image row-sum selector
    # g_ref:    [140, 10]         f32   lane gatherer G[pw*10+o, o'] = (o == o')
    # bfc_ref:  [1, 10]           f32   FC bias
    # o_ref:    [1, IMG, 10]      f32   class probabilities for the IMG packed images
    x = x_ref[0]                                                               # [IMG*28, 90]

    # --- Conv2d(1,8,3,p=1): single K=90 MXU pass (all dy/dx taps fused) ---
    conv = jnp.dot(x, w_ref[...], preferred_element_type=jnp.float32)          # [IMG*28, 224]
    act = jnp.maximum(conv + brow_ref[...], 0.0)                               # bias + ReLU (f32)
    act_b = act.astype(jnp.bfloat16)

    # --- MaxPool2d(2,2): even/odd selector matmuls + VPU max, per axis ---
    je = jnp.dot(rsel_ref[0], act_b, preferred_element_type=jnp.float32)       # [IMG*14, 224]
    jo = jnp.dot(rsel_ref[1], act_b, preferred_element_type=jnp.float32)
    pa = jnp.maximum(je, jo).astype(jnp.bfloat16)                              # pool over j
    pe = jnp.dot(pa, csel_ref[0], preferred_element_type=jnp.float32)          # [IMG*14, 112]
    po = jnp.dot(pa, csel_ref[1], preferred_element_type=jnp.float32)
    pooled = jnp.maximum(pe, po).astype(jnp.bfloat16)                          # pool over i

    # --- flatten (c,ph,pw) + Linear(1568,10): 112-deep contraction on the MXU ---
    z = jnp.dot(pooled, w3_ref[...], preferred_element_type=jnp.float32)       # [IMG*14, 140]
    zm = z * mask_ref[...]                                                     # keep pw == pw'
    s1 = jnp.dot(ssel_ref[...], zm, preferred_element_type=jnp.float32)        # [IMG, 140]
    logits = jnp.dot(s1, g_ref[...],
                     preferred_element_type=jnp.float32) + bfc_ref[...]        # [IMG, 10]

    # --- Softmax(dim=1), one lane-dense [IMG, 10] store per grid step ---
    m = jnp.max(logits, axis=1, keepdims=True)
    e = jnp.exp(logits - m)
    o_ref[0] = e / jnp.sum(e, axis=1, keepdims=True)


def simple_net_forward(x, wc, bc, wf, bf):
    """x: [B,1,28,28] f32 (NCHW). wc: [8,1,3,3], bc: [8], wf: [10,1568], bf: [10]."""
    b = x.shape[0]
    f32, bf16 = jnp.float32, jnp.bfloat16

    # images per grid step: <=4 (fills the 128-lane vregs), keep >=2 steps when b>=2 (v7x 2 TCs)
    img = max(1, min(4, -(-b // 2)))
    g = -(-b // img)
    bp = g * img

    # ---- single host prep of the input: pad + dx-shift stack + lane-pack + bf16 ----
    xp = jnp.pad(x[:, 0].astype(f32), ((0, bp - b), (1, 1), (1, 1)))           # [bp, 30, 30]
    xsh = jnp.stack([xp[:, :, dx:dx + W] for dx in range(KW)], axis=1)         # [bp, 3, 30, 28]
    xbig = xsh.reshape(g, img, KW, H + 2, W).transpose(0, 1, 4, 2, 3)          # [g,img,28,3,30]
    xbig = xbig.reshape(g, img * W, KDIM).astype(bf16)                         # [g, img*28, 90]

    # ---- conv weights: banded [90, 224], wbig[dx*30+r, c*28+i] = wc[c,0,dy,dx] with r = i+dy ----
    wc3 = wc.reshape(C_OUT, KH, KW).astype(f32)
    shift = jnp.stack([jnp.eye(H, H + 2, k=dy, dtype=f32) for dy in range(KH)])   # [3, 28, 30]
    wbig = jnp.einsum('cyx,yir->xrci', wc3, shift).reshape(KDIM, CH).astype(bf16)  # [90, 224]
    brow = jnp.repeat(bc.astype(f32), H).reshape(1, CH)                        # [1, 224]

    # ---- pooling selectors (exact 0/1, bf16) ----
    rows = jnp.arange(img * POOL_W)
    rsrc = (rows // POOL_W) * W + 2 * (rows % POOL_W)                          # img*28 + 2*pw
    rsel = jnp.stack([jax.nn.one_hot(rsrc, img * W, dtype=f32),
                      jax.nn.one_hot(rsrc + 1, img * W, dtype=f32)]).astype(bf16)
    cols = jnp.arange(CP)
    csrc = (cols // POOL_H) * H + 2 * (cols % POOL_H)                          # c*28 + 2*ph
    csel = jnp.stack([jax.nn.one_hot(csrc, CH, dtype=f32).T,
                      jax.nn.one_hot(csrc + 1, CH, dtype=f32).T]).astype(bf16)  # [2, 224, 112]

    # ---- FC weight folded for the reshape-free MXU contraction ----
    #   torch.flatten index = c*196 + ph*14 + pw  ->  w3[c*14+ph, pw*10+o]
    w3 = wf.astype(f32).reshape(FC_OUT, C_OUT, POOL_H, POOL_W)
    w3 = w3.transpose(1, 2, 3, 0).reshape(CP, PWO).astype(bf16)                # [112, 140]
    mask = jnp.tile(jnp.repeat(jnp.eye(POOL_W, dtype=f32), FC_OUT, axis=1), (img, 1))
    ssel = jnp.repeat(jnp.eye(img, dtype=f32), POOL_W, axis=1)                 # [img, img*14]
    gmat = jnp.tile(jnp.eye(FC_OUT, dtype=f32), (POOL_W, 1))                   # [140, 10]
    bfc = bf.astype(f32).reshape(1, FC_OUT)

    def const(arr):
        nd = arr.ndim
        return pl.BlockSpec(arr.shape, lambda i: (0,) * nd)

    out = pl.pallas_call(
        simplenet_kernel,
        out_shape=jax.ShapeDtypeStruct((g, img, FC_OUT), f32),
        grid=(g,),
        in_specs=[
            pl.BlockSpec((1, img * W, KDIM), lambda i: (i, 0, 0)),             # packed images
            const(wbig), const(brow), const(rsel), const(csel),
            const(w3), const(mask), const(ssel), const(gmat), const(bfc),
        ],
        out_specs=pl.BlockSpec((1, img, FC_OUT), lambda i: (i, 0, 0)),
        compiler_params=pltpu.CompilerParams(dimension_semantics=("parallel",)),
    )(xbig, wbig, brow, rsel, csel, w3, mask, ssel, gmat, bfc)
    return out.reshape(bp, FC_OUT)[:b]


def reference(x, wc, bc, wf, bf):
    """Pure-JAX f32 reference of SimpleNet.forward for verification."""
    b = x.shape[0]
    xp = jnp.pad(x[:, 0], ((0, 0), (1, 1), (1, 1)))
    chans = []
    for c in range(C_OUT):
        acc = jnp.full((b, H, W), bc[c], dtype=jnp.float32)
        for dy in range(KH):
            for dx in range(KW):
                acc = acc + wc[c, 0, dy, dx] * xp[:, dy:dy + H, dx:dx + W]
        chans.append(acc)
    conv = jnp.maximum(jnp.stack(chans, axis=1), 0.0)
    pooled = conv.reshape(b, C_OUT, POOL_H, 2, POOL_W, 2).max(axis=(3, 5))
    feat = pooled.reshape(b, FC_IN)
    logits = feat @ wf.T + bf
    return jax.nn.softmax(logits, axis=1)


if __name__ == "__main__":
    key = jax.random.PRNGKey(0)
    k1, k2, k3, k4, k5 = jax.random.split(key, 5)
    # Deterministic synthetic parameters (shapes from SimpleNet.__init__).
    x = jax.random.normal(k1, (B, 1, H, W), jnp.float32)
    wc = jax.random.normal(k2, (C_OUT, 1, KH, KW), jnp.float32) * 0.1
    bc = jax.random.normal(k3, (C_OUT,), jnp.float32) * 0.1
    wf = jax.random.normal(k4, (FC_OUT, FC_IN), jnp.float32) * 0.02
    bf = jax.random.normal(k5, (FC_OUT,), jnp.float32) * 0.02

    fwd = jax.jit(simple_net_forward)
    out = jax.block_until_ready(fwd(x, wc, bc, wf, bf))

    ref = reference(x, wc, bc, wf, bf)
    assert out.shape == (B, FC_OUT)
    # bf16 MXU operands (per perf review) -> relaxed tolerance vs the f32 reference.
    assert bool(jnp.allclose(out, ref, atol=1e-2, rtol=1e-2)), "mismatch vs reference"
    print("KERNEL_OK")
</pallas_src>

<mosaic_0001>
module attributes {stable_mosaic.version = 11 : i64} {
  func.func @simplenet_kernel(%arg0: i32, %arg1: memref<1x112x90xbf16, #tpu.memory_space<vmem>>, %arg2: memref<90x224xbf16, #tpu.memory_space<vmem>>, %arg3: memref<1x224xf32, #tpu.memory_space<vmem>>, %arg4: memref<2x56x112xbf16, #tpu.memory_space<vmem>>, %arg5: memref<2x224x112xbf16, #tpu.memory_space<vmem>>, %arg6: memref<112x140xbf16, #tpu.memory_space<vmem>>, %arg7: memref<56x140xf32, #tpu.memory_space<vmem>>, %arg8: memref<4x56xf32, #tpu.memory_space<vmem>>, %arg9: memref<140x10xf32, #tpu.memory_space<vmem>>, %arg10: memref<1x10xf32, #tpu.memory_space<vmem>>, %arg11: memref<1x4x10xf32, #tpu.memory_space<vmem>>) attributes {dimension_semantics = [#tpu.dimension_semantics<parallel>], iteration_bounds = array<i64: 2>, scalar_prefetch = 0 : i64, scratch_operands = 0 : i64, tpu.core_type = #tpu.core_type<tc>, window_params = [{transform_indices = @transform_0, window_bounds = array<i64: 1, 112, 90>}, {pipeline_mode = #tpu.pipeline_mode<synchronous>, transform_indices = @transform_1, window_bounds = array<i64: 90, 224>}, {pipeline_mode = #tpu.pipeline_mode<synchronous>, transform_indices = @transform_2, window_bounds = array<i64: 1, 224>}, {pipeline_mode = #tpu.pipeline_mode<synchronous>, transform_indices = @transform_3, window_bounds = array<i64: 2, 56, 112>}, {pipeline_mode = #tpu.pipeline_mode<synchronous>, transform_indices = @transform_4, window_bounds = array<i64: 2, 224, 112>}, {pipeline_mode = #tpu.pipeline_mode<synchronous>, transform_indices = @transform_5, window_bounds = array<i64: 112, 140>}, {pipeline_mode = #tpu.pipeline_mode<synchronous>, transform_indices = @transform_6, window_bounds = array<i64: 56, 140>}, {pipeline_mode = #tpu.pipeline_mode<synchronous>, transform_indices = @transform_7, window_bounds = array<i64: 4, 56>}, {pipeline_mode = #tpu.pipeline_mode<synchronous>, transform_indices = @transform_8, window_bounds = array<i64: 140, 10>}, {pipeline_mode = #tpu.pipeline_mode<synchronous>, transform_indices = @transform_9, window_bounds = array<i64: 1, 10>}, {transform_indices = @transform_10, window_bounds = array<i64: 1, 4, 10>}]} {
    %c0 = arith.constant 0 : index
    %c0_0 = arith.constant 0 : index
    %c0_1 = arith.constant 0 : index
    %0 = vector.load %arg1[%c0, %c0_0, %c0_1] : memref<1x112x90xbf16, #tpu.memory_space<vmem>>, vector<1x112x90xbf16>
    %1 = vector.shape_cast %0 : vector<1x112x90xbf16> to vector<112x90xbf16>
    %c0_2 = arith.constant 0 : index
    %c0_3 = arith.constant 0 : index
    %2 = vector.load %arg2[%c0_2, %c0_3] : memref<90x224xbf16, #tpu.memory_space<vmem>>, vector<90x224xbf16>
    %cst = arith.constant dense<0.000000e+00> : vector<112x224xf32>
    %3 = tpu.matmul %1, %2, %cst {dimension_numbers = #tpu.dot_dimension_numbers<[1], [0], [0], [1], [0, 0, 1, 1], [], []>} : vector<112x90xbf16>, vector<90x224xbf16>, vector<112x224xf32> -> vector<112x224xf32>
    %c0_4 = arith.constant 0 : index
    %c0_5 = arith.constant 0 : index
    %4 = vector.load %arg3[%c0_4, %c0_5] : memref<1x224xf32, #tpu.memory_space<vmem>>, vector<1x224xf32>
    %5 = vector.broadcast %4 : vector<1x224xf32> to vector<112x224xf32>
    %6 = arith.addf %3, %5 : vector<112x224xf32>
    %cst_6 = arith.constant 0.000000e+00 : f32
    %7 = vector.broadcast %cst_6 : f32 to vector<112x224xf32>
    %8 = arith.maximumf %6, %7 : vector<112x224xf32>
    %9 = arith.truncf %8 : vector<112x224xf32> to vector<112x224xbf16>
    %c0_7 = arith.constant 0 : index
    %c0_8 = arith.constant 0 : index
    %c0_9 = arith.constant 0 : index
    %10 = vector.load %arg4[%c0_7, %c0_8, %c0_9] : memref<2x56x112xbf16, #tpu.memory_space<vmem>>, vector<1x56x112xbf16>
    %11 = vector.shape_cast %10 : vector<1x56x112xbf16> to vector<56x112xbf16>
    %cst_10 = arith.constant dense<0.000000e+00> : vector<56x224xf32>
    %12 = tpu.matmul %11, %9, %cst_10 {dimension_numbers = #tpu.dot_dimension_numbers<[1], [0], [0], [1], [0, 0, 1, 1], [], []>} : vector<56x112xbf16>, vector<112x224xbf16>, vector<56x224xf32> -> vector<56x224xf32>
    %c1 = arith.constant 1 : index
    %c0_11 = arith.constant 0 : index
    %c0_12 = arith.constant 0 : index
    %13 = vector.load %arg4[%c1, %c0_11, %c0_12] : memref<2x56x112xbf16, #tpu.memory_space<vmem>>, vector<1x56x112xbf16>
    %14 = vector.shape_cast %13 : vector<1x56x112xbf16> to vector<56x112xbf16>
    %cst_13 = arith.constant dense<0.000000e+00> : vector<56x224xf32>
    %15 = tpu.matmul %14, %9, %cst_13 {dimension_numbers = #tpu.dot_dimension_numbers<[1], [0], [0], [1], [0, 0, 1, 1], [], []>} : vector<56x112xbf16>, vector<112x224xbf16>, vector<56x224xf32> -> vector<56x224xf32>
    %16 = arith.maximumf %12, %15 : vector<56x224xf32>
    %17 = arith.truncf %16 : vector<56x224xf32> to vector<56x224xbf16>
    %c0_14 = arith.constant 0 : index
    %c0_15 = arith.constant 0 : index
    %c0_16 = arith.constant 0 : index
    %18 = vector.load %arg5[%c0_14, %c0_15, %c0_16] : memref<2x224x112xbf16, #tpu.memory_space<vmem>>, vector<1x224x112xbf16>
    %19 = vector.shape_cast %18 : vector<1x224x112xbf16> to vector<224x112xbf16>
    %cst_17 = arith.constant dense<0.000000e+00> : vector<56x112xf32>
    %20 = tpu.matmul %17, %19, %cst_17 {dimension_numbers = #tpu.dot_dimension_numbers<[1], [0], [0], [1], [0, 0, 1, 1], [], []>} : vector<56x224xbf16>, vector<224x112xbf16>, vector<56x112xf32> -> vector<56x112xf32>
    %c1_18 = arith.constant 1 : index
    %c0_19 = arith.constant 0 : index
    %c0_20 = arith.constant 0 : index
    %21 = vector.load %arg5[%c1_18, %c0_19, %c0_20] : memref<2x224x112xbf16, #tpu.memory_space<vmem>>, vector<1x224x112xbf16>
    %22 = vector.shape_cast %21 : vector<1x224x112xbf16> to vector<224x112xbf16>
    %cst_21 = arith.constant dense<0.000000e+00> : vector<56x112xf32>
    %23 = tpu.matmul %17, %22, %cst_21 {dimension_numbers = #tpu.dot_dimension_numbers<[1], [0], [0], [1], [0, 0, 1, 1], [], []>} : vector<56x224xbf16>, vector<224x112xbf16>, vector<56x112xf32> -> vector<56x112xf32>
    %24 = arith.maximumf %20, %23 : vector<56x112xf32>
    %25 = arith.truncf %24 : vector<56x112xf32> to vector<56x112xbf16>
    %c0_22 = arith.constant 0 : index
    %c0_23 = arith.constant 0 : index
    %26 = vector.load %arg6[%c0_22, %c0_23] : memref<112x140xbf16, #tpu.memory_space<vmem>>, vector<112x140xbf16>
    %cst_24 = arith.constant dense<0.000000e+00> : vector<56x140xf32>
    %27 = tpu.matmul %25, %26, %cst_24 {dimension_numbers = #tpu.dot_dimension_numbers<[1], [0], [0], [1], [0, 0, 1, 1], [], []>} : vector<56x112xbf16>, vector<112x140xbf16>, vector<56x140xf32> -> vector<56x140xf32>
    %c0_25 = arith.constant 0 : index
    %c0_26 = arith.constant 0 : index
    %28 = vector.load %arg7[%c0_25, %c0_26] : memref<56x140xf32, #tpu.memory_space<vmem>>, vector<56x140xf32>
    %29 = arith.mulf %27, %28 : vector<56x140xf32>
    %c0_27 = arith.constant 0 : index
    %c0_28 = arith.constant 0 : index
    %30 = vector.load %arg8[%c0_27, %c0_28] : memref<4x56xf32, #tpu.memory_space<vmem>>, vector<4x56xf32>
    %cst_29 = arith.constant dense<0.000000e+00> : vector<4x140xf32>
    %31 = tpu.matmul %30, %29, %cst_29 {dimension_numbers = #tpu.dot_dimension_numbers<[1], [0], [0], [1], [0, 0, 1, 1], [], []>} : vector<4x56xf32>, vector<56x140xf32>, vector<4x140xf32> -> vector<4x140xf32>
    %c0_30 = arith.constant 0 : index
    %c0_31 = arith.constant 0 : index
    %32 = vector.load %arg9[%c0_30, %c0_31] : memref<140x10xf32, #tpu.memory_space<vmem>>, vector<140x10xf32>
    %cst_32 = arith.constant dense<0.000000e+00> : vector<4x10xf32>
    %33 = tpu.matmul %31, %32, %cst_32 {dimension_numbers = #tpu.dot_dimension_numbers<[1], [0], [0], [1], [0, 0, 1, 1], [], []>} : vector<4x140xf32>, vector<140x10xf32>, vector<4x10xf32> -> vector<4x10xf32>
    %c0_33 = arith.constant 0 : index
    %c0_34 = arith.constant 0 : index
    %34 = vector.load %arg10[%c0_33, %c0_34] : memref<1x10xf32, #tpu.memory_space<vmem>>, vector<1x10xf32>
    %35 = vector.broadcast %34 : vector<1x10xf32> to vector<4x10xf32>
    %36 = arith.addf %33, %35 : vector<4x10xf32>
    %cst_35 = arith.constant dense<0xFF800000> : vector<4xf32>
    %37 = vector.multi_reduction <maximumf>, %36, %cst_35 [1] : vector<4x10xf32> to vector<4xf32>
    %38 = vector.shape_cast %37 : vector<4xf32> to vector<4x1xf32>
    %39 = vector.broadcast %38 : vector<4x1xf32> to vector<4x10xf32>
    %40 = arith.subf %36, %39 : vector<4x10xf32>
    %41 = math.exp %40 : vector<4x10xf32>
    %cst_36 = arith.constant dense<0.000000e+00> : vector<4xf32>
    %42 = vector.multi_reduction <add>, %41, %cst_36 [1] : vector<4x10xf32> to vector<4xf32>
    %43 = vector.shape_cast %42 : vector<4xf32> to vector<4x1xf32>
    %44 = vector.broadcast %43 : vector<4x1xf32> to vector<4x10xf32>
    %45 = arith.divf %41, %44 : vector<4x10xf32>
    %c0_37 = arith.constant 0 : index
    %c0_38 = arith.constant 0 : index
    %c0_39 = arith.constant 0 : index
    %46 = vector.load %arg11[%c0_37, %c0_38, %c0_39] : memref<1x4x10xf32, #tpu.memory_space<vmem>>, vector<1x4x10xf32>
    %47 = vector.shape_cast %46 : vector<1x4x10xf32> to vector<4x10xf32>
    %48 = vector.shape_cast %45 : vector<4x10xf32> to vector<1x4x10xf32>
    tpu.vector_store %arg11[%c0_37, %c0_38, %c0_39], %48 {strides = array<i32>} : memref<1x4x10xf32, #tpu.memory_space<vmem>>, vector<1x4x10xf32>,
    return
  }
  func.func @transform_0(%arg0: i32) -> (i32, i32, i32) {
    %c0_i32 = arith.constant 0 : i32
    %c0_i32_0 = arith.constant 0 : i32
    %c0_i32_1 = arith.constant 0 : i32
    return %arg0, %c0_i32, %c0_i32_0 : i32, i32, i32
  }
  func.func @transform_1(%arg0: i32) -> (i32, i32) {
    %c0_i32 = arith.constant 0 : i32
    %c0_i32_0 = arith.constant 0 : i32
    %c0_i32_1 = arith.constant 0 : i32
    return %c0_i32, %c0_i32_0 : i32, i32
  }
  func.func @transform_2(%arg0: i32) -> (i32, i32) {
    %c0_i32 = arith.constant 0 : i32
    %c0_i32_0 = arith.constant 0 : i32
    %c0_i32_1 = arith.constant 0 : i32
    return %c0_i32, %c0_i32_0 : i32, i32
  }
  func.func @transform_3(%arg0: i32) -> (i32, i32, i32) {
    %c0_i32 = arith.constant 0 : i32
    %c0_i32_0 = arith.constant 0 : i32
    %c0_i32_1 = arith.constant 0 : i32
    %c0_i32_2 = arith.constant 0 : i32
    return %c0_i32, %c0_i32_0, %c0_i32_1 : i32, i32, i32
  }
  func.func @transform_4(%arg0: i32) -> (i32, i32, i32) {
    %c0_i32 = arith.constant 0 : i32
    %c0_i32_0 = arith.constant 0 : i32
    %c0_i32_1 = arith.constant 0 : i32
    %c0_i32_2 = arith.constant 0 : i32
    return %c0_i32, %c0_i32_0, %c0_i32_1 : i32, i32, i32
  }
  func.func @transform_5(%arg0: i32) -> (i32, i32) {
    %c0_i32 = arith.constant 0 : i32
    %c0_i32_0 = arith.constant 0 : i32
    %c0_i32_1 = arith.constant 0 : i32
    return %c0_i32, %c0_i32_0 : i32, i32
  }
  func.func @transform_6(%arg0: i32) -> (i32, i32) {
    %c0_i32 = arith.constant 0 : i32
    %c0_i32_0 = arith.constant 0 : i32
    %c0_i32_1 = arith.constant 0 : i32
    return %c0_i32, %c0_i32_0 : i32, i32
  }
  func.func @transform_7(%arg0: i32) -> (i32, i32) {
    %c0_i32 = arith.constant 0 : i32
    %c0_i32_0 = arith.constant 0 : i32
    %c0_i32_1 = arith.constant 0 : i32
    return %c0_i32, %c0_i32_0 : i32, i32
  }
  func.func @transform_8(%arg0: i32) -> (i32, i32) {
    %c0_i32 = arith.constant 0 : i32
    %c0_i32_0 = arith.constant 0 : i32
    %c0_i32_1 = arith.constant 0 : i32
    return %c0_i32, %c0_i32_0 : i32, i32
  }
  func.func @transform_9(%arg0: i32) -> (i32, i32) {
    %c0_i32 = arith.constant 0 : i32
    %c0_i32_0 = arith.constant 0 : i32
    %c0_i32_1 = arith.constant 0 : i32
    return %c0_i32, %c0_i32_0 : i32, i32
  }
  func.func @transform_10(%arg0: i32) -> (i32, i32, i32) {
    %c0_i32 = arith.constant 0 : i32
    %c0_i32_0 = arith.constant 0 : i32
    %c0_i32_1 = arith.constant 0 : i32
    return %arg0, %c0_i32, %c0_i32_0 : i32, i32, i32
  }
}

</mosaic_0001>

<bundles_post_ra>
// kernel: tile.12
= control target key start
LH: loop header
LB: loop body
LE: loop exit
PB: predicated region body
PF: predicated region fallthrough
CT: control target
= control target key end

     0   :  { %vm4_vm0 = vcmask 97280   ;;  %s281_s0 = inlined_call_operand.vmem [shape: f32[4,14,140], index: 0, kind: input, shape index: {}]   ;;  %s282_s1 = inlined_call_operand.vmem [shape: f32[56,140], index: 1, kind: output, shape index: {}]  }
   0x1   :  { %v92_v0 = vld [vmem:[%s281_s0 + $0x8] sm:$0xff]   ;;  %v94_v1 = vld [vmem:[%s281_s0 + $0x18] sm:$0x3f]   ;;  %v52_v8 = vld [vmem:[%s281_s0] sm:$0xff]  }
   0x2   :  { %v96_v2 = vld [vmem:[%s281_s0 + $0x28] sm:$0xff]   ;;  %93 = vst.msk [vmem:[%s282_s1 + $0x8] sm:$0xff] %vm4_vm0, %v92_v0   ;;  %95 = vst.msk [vmem:[%s282_s1 + $0x18] sm:$0x3f] %vm4_vm0, %v94_v1   ;;  %v99_v3 = vld [vmem:[%s281_s0 + $0x38] sm:$0x3f]  }
   0x3   :  { %97 = vst.msk [vmem:[%s282_s1 + $0x1e] sm:$0x3] %vm4_vm0, %v96_v2   ;;  %98 = vst.msk [vmem:[%s282_s1 + $0x26] sm:$0xfc] %vm4_vm0, %v96_v2   ;;  %v102_v4 = vld [vmem:[%s281_s0 + $0x48] sm:$0xff]   ;;  %v115_v10 = vld [vmem:[%s281_s0 + $0x20] sm:$0xff]  }
   0x4   :  { %v105_v5 = vld [vmem:[%s281_s0 + $0x58] sm:$0x3f]   ;;  %100 = vst.msk [vmem:[%s282_s1 + $0x2e] sm:$0x3] %vm4_vm0, %v99_v3   ;;  %101 = vst.msk [vmem:[%s282_s1 + $0x36] sm:$0x3c] %vm4_vm0, %v99_v3  }
   0x5   :  { %103 = vst.msk [vmem:[%s282_s1 + $0x3c] sm:$0xf] %vm4_vm0, %v102_v4   ;;  %104 = vst.msk [vmem:[%s282_s1 + $0x44] sm:$0xf0] %vm4_vm0, %v102_v4   ;;  %v108_v6 = vld [vmem:[%s281_s0 + $0x68] sm:$0xff]   ;;  %v121_v12 = vld [vmem:[%s281_s0 + $0x40] sm:$0xff]  }
   0x6   :  { %106 = vst.msk [vmem:[%s282_s1 + $0x4c] sm:$0xf] %vm4_vm0, %v105_v5   ;;  %107 = vst.msk [vmem:[%s282_s1 + $0x54] sm:$0x30] %vm4_vm0, %v105_v5   ;;  %v111_v7 = vld [vmem:[%s281_s0 + $0x78] sm:$0x3f]  }
   0x7   :  { %109 = vst.msk [vmem:[%s282_s1 + $0x5a] sm:$0x3f] %vm4_vm0, %v108_v6   ;;  %110 = vst.msk [vmem:[%s282_s1 + $0x62] sm:$0xc0] %vm4_vm0, %v108_v6   ;;  %v113_v9 = vld [vmem:[%s281_s0 + $0x10] sm:$0x3f]  }
   0x8   :  { %112 = vst.msk [vmem:[%s282_s1 + $0x6a] sm:$0x3f] %vm4_vm0, %v111_v7   ;;  %53 = vst [vmem:[%s282_s1] sm:$0xff] %v52_v8   ;;  %v118_v11 = vld [vmem:[%s281_s0 + $0x30] sm:$0x3f]   ;;  %v127_v14 = vld [vmem:[%s281_s0 + $0x60] sm:$0xff]  }
   0x9   :  { %114 = vst [vmem:[%s282_s1 + $0x10] sm:$0x3f] %v113_v9   ;;  %116 = vst [vmem:[%s282_s1 + $0x16] sm:$0x3] %v115_v10   ;;  %v124_v13 = vld [vmem:[%s281_s0 + $0x50] sm:$0x3f]  }
   0xa   :  { %117 = vst [vmem:[%s282_s1 + $0x1e] sm:$0xfc] %v115_v10   ;;  %119 = vst [vmem:[%s282_s1 + $0x26] sm:$0x3] %v118_v11   ;;  %v130_v15 = vld [vmem:[%s281_s0 + $0x70] sm:$0x3f]  }
   0xb   :  { %120 = vst [vmem:[%s282_s1 + $0x2e] sm:$0x3c] %v118_v11   ;;  %122 = vst [vmem:[%s282_s1 + $0x34] sm:$0xf] %v121_v12  }
   0xc   :  { %123 = vst [vmem:[%s282_s1 + $0x3c] sm:$0xf0] %v121_v12   ;;  %125 = vst [vmem:[%s282_s1 + $0x44] sm:$0xf] %v124_v13  }
   0xd   :  { %126 = vst [vmem:[%s282_s1 + $0x4c] sm:$0x30] %v124_v13   ;;  %128 = vst [vmem:[%s282_s1 + $0x52] sm:$0x3f] %v127_v14  }
   0xe   :  { %129 = vst [vmem:[%s282_s1 + $0x5a] sm:$0xc0] %v127_v14   ;;  %131 = vst [vmem:[%s282_s1 + $0x62] sm:$0x3f] %v130_v15  }

// kernel: tile.17
= control target key start
LH: loop header
LB: loop body
LE: loop exit
PB: predicated region body
PF: predicated region fallthrough
CT: control target
= control target key end

     0   :  { %s108_s6 = smov 3  ;;  %vm60_vm0 = vcmask 64512   ;;  %s70_s9 = smov 3  ;;  %vm6_vm1 = vcmask 1043458   ;;  %vm10_vm2 = vcmask 1045508   ;;  %vm14_vm3 = vcmask 1047558   ;;  %s944_s0 = inlined_call_operand.vmem [shape: f32[14,10,10], index: 0, kind: input, shape index: {}]   ;;  %s945_s1 = inlined_call_operand.vmem [shape: f32[140,10], index: 1, kind: output, shape index: {}]  }
   0x1   :  { %v465_v0 = vld [vmem:[%s944_s0 + $0x8b] ss:$16 sm:%s108_s6]   ;;  %s547_s10 = smov 110   ;;  %v457_v1 = vld [vmem:[%s944_s0 + $0x8c] ss:$16 sm:%s70_s9]   ;;  %s73_s13 = smov 3 }
   0x2   :  { %110 = vrot.lane.b32.xlu1 %v465_v0, %s547_s10  ;;  %s86_s14 = smov 3  ;;  %v458_v2 = vld [vmem:[%s944_s0 + $0x8c] ss:$16 sm:%s73_s13]   ;;  %s89_s19 = smov 12  ;;  %vm16_vm4 = vcmask 80896   ;;  %vm64_vm5 = vcmask 15360  }
   0x3   :  { %v461_v3 = vld [vmem:[%s944_s0 + $0xb] ss:$16 sm:%s86_s14]   ;;  %s94_s20 = smov 48  ;;  %v76_v4 = vsel %vm60_vm0, %v458_v2, %v457_v1  ;;  %s99_s25 = smov 192  ;;  %vm67_vm6 = vcmask 1048512   ;;  %vm105_vm7 = vcmask 982896  }
   0x4   :  { %v462_v5 = vld [vmem:[%s944_s0 + $0xb] ss:$16 sm:%s89_s19]   ;;  %s25_s26 = smov 3  ;;  %s548_s27 = smov 120   ;;  %vm135_vm8 = vcmask 900896   ;;  %vm165_vm9 = vcmask 818896  }
   0x5   :  { %v463_v6 = vld [vmem:[%s944_s0 + $0xb] ss:$16 sm:%s94_s20]   ;;  %77 = vrot.lane.b32.xlu0 %v76_v4, %s548_s27  ;;  %v92_v7 = vsel %vm6_vm1, %v462_v5, %v461_v3  ;;  %s28_s30 = smov 12  ;;  %s33_s2 = smov 48  ;;  %vm195_vm10 = vcmask 736896   ;;  %vm225_vm11 = vcmask 654896  }
   0x6   :  { %v464_v8 = vld [vmem:[%s944_s0 + $0xb] ss:$16 sm:%s99_s25]   ;;  %v97_v9 = vsel %vm10_vm2, %v463_v6, %v92_v7  ;;  %v448_v10 = vld [vmem:[%s944_s0 + $0xc] ss:$16 sm:%s25_s26]   ;;  %s38_s7 = smov 192  ;;  %s43_s8 = smov 3 }
   0x7   :  { %v449_v11 = vld [vmem:[%s944_s0 + $0xc] ss:$16 sm:%s28_s30]   ;;  %v102_v12 = vsel %vm14_vm3, %v464_v8, %v97_v9  ;;  %s46_s14 = smov 12  ;;  %s51_s15 = smov 48  ;;  %vm255_vm12 = vcmask 572896   ;;  %vm285_vm13 = vcmask 490896  }
   0x8   :  { %v31_v13 = vsel %vm6_vm1, %v449_v11, %v448_v10  ;;  %v450_v14 = vld [vmem:[%s944_s0 + $0xc] ss:$16 sm:%s33_s2]   ;;  %103 = vrot.lane.b32.xlu1 %v102_v12, %s547_s10  ;;  %s56_s17 = smov 192  ;;  %s138_s22 = smov 3  ;;  %vm315_vm14 = vcmask 408896   ;;  %vm345_vm15 = vcmask 326896  }
   0x9   :  { %v451_v15 = vld [vmem:[%s944_s0 + $0xc] ss:$16 sm:%s38_s7]   ;;  %v36_v16 = vsel %vm10_vm2, %v450_v14, %v31_v13  ;;  %s116_s23 = smov 3  ;;  %v471_v23 = vld [vmem:[%s944_s0 + $0x8a] ss:$16 sm:%s138_s22]   ;;  %s119_s29 = smov 12 }
   0xa   :  { %v452_v17 = vld [vmem:[%s944_s0 + $0xc] ss:$16 sm:%s43_s8]   ;;  %v41_v20 = vsel %vm14_vm3, %v451_v15, %v36_v16  ;;  %s124_s30 = smov 48  ;;  %v467_v25 = vld [vmem:[%s944_s0 + $0xa] ss:$16 sm:%s116_s23]   ;;  %s129_s6 = smov 192 }
   0xb   :  { %v453_v18 = vld [vmem:[%s944_s0 + $0xc] ss:$16 sm:%s46_s14]   ;;  %v468_v26 = vld [vmem:[%s944_s0 + $0xa] ss:$16 sm:%s119_s29]   ;;  %s549_s7 = smov 100   ;;  %s168_s11 = smov 3 }
   0xc   :  { %v454_v19 = vld [vmem:[%s944_s0 + $0xc] ss:$16 sm:%s51_s15]   ;;  %v49_v21 = vsel %vm6_vm1, %v453_v18, %v452_v17  ;;  %140 = vrot.lane.b32.xlu1 %v471_v23, %s549_s7  ;;  %v122_v28 = vsel %vm6_vm1, %v468_v26, %v467_v25  ;;  %s146_s12 = smov 3  ;;  %s149_s16 = smov 12 }
   0xd   :  { %v455_v22 = vld [vmem:[%s944_s0 + $0xc] ss:$16 sm:%s56_s17]   ;;  %v54_v24 = vsel %vm10_vm2, %v454_v19, %v49_v21  ;;  %v469_v29 = vld [vmem:[%s944_s0 + $0xa] ss:$16 sm:%s124_s30]   ;;  %s154_s17 = smov 48  ;;  %s159_s19 = smov 192 }
   0xe   :  { %v59_v27 = vsel %vm14_vm3, %v455_v22, %v54_v24  ;;  %v127_v31 = vsel %vm10_vm2, %v469_v29, %v122_v28  ;;  %v470_v32 = vld [vmem:[%s944_s0 + $0xa] ss:$16 sm:%s129_s6]   ;;  %v477_v33 = vld [vmem:[%s944_s0 + $0x89] ss:$16 sm:%s168_s11]   ;;  %s198_s24 = smov 3  ;;  %s176_s25 = smov 3 }
   0xf   :  { %v61_v30 = vsel %vm60_vm0, %v59_v27, %v41_v20  ;;  %v473_v34 = vld [vmem:[%s944_s0 + $0x9] ss:$16 sm:%s146_s12]   ;;  %v132_v35 = vsel %vm14_vm3, %v470_v32, %v127_v31  ;;  %s550_s26 = smov 90   ;;  %s179_s30 = smov 12  ;;  %v483_v41 = vld [vmem:[%s944_s0 + $0x88] ss:$16 sm:%s198_s24]  }
  0x10   :  { %62 = vrot.lane.b32.xlu0 %v61_v30, %s548_s27  ;;  %v474_v36 = vld [vmem:[%s944_s0 + $0x9] ss:$16 sm:%s149_s16]   ;;  %170 = vrot.lane.b32.xlu1 %v477_v33, %s550_s26  ;;  %s184_s2 = smov 48  ;;  %s189_s8 = smov 192  ;;  %vm375_vm0 = vcmask 244896  }
  0x11   :  { %v475_v37 = vld [vmem:[%s944_s0 + $0x9] ss:$16 sm:%s154_s17]   ;;  %v152_v38 = vsel %vm6_vm1, %v474_v36, %v473_v34  ;;  %v479_v42 = vld [vmem:[%s944_s0 + $0x8] ss:$16 sm:%s176_s25]   ;;  %s228_s11 = smov 3  ;;  %s206_s12 = smov 3 }
  0x12   :  { %v476_v39 = vld [vmem:[%s944_s0 + $0x9] ss:$16 sm:%s159_s19]   ;;  %v157_v40 = vsel %vm10_vm2, %v475_v37, %v152_v38  ;;  %v480_v43 = vld [vmem:[%s944_s0 + $0x8] ss:$16 sm:%s179_s30]   ;;  %s209_s16 = smov 12  ;;  %s214_s17 = smov 48 }
  0x13   :  { %v162_v44 = vsel %vm14_vm3, %v476_v39, %v157_v40  ;;  %v182_v45 = vsel %vm6_vm1, %v480_v43, %v479_v42  ;;  %v481_v46 = vld [vmem:[%s944_s0 + $0x8] ss:$16 sm:%s184_s2]   ;;  %s551_s27 = smov 80   ;;  %v489_v49 = vld [vmem:[%s944_s0 + $0x87] ss:$16 sm:%s228_s11]   ;;  %s219_s20 = smov 192 }
  0x14   :  { %133 = vrot.lane.b32.xlu0 %v132_v35, %s549_s7  ;;  %v482_v47 = vld [vmem:[%s944_s0 + $0x8] ss:$16 sm:%s189_s8]   ;;  %200 = vrot.lane.b32.xlu1 %v483_v41, %s551_s27  ;;  %v187_v48 = vsel %vm10_vm2, %v481_v46, %v182_v45  ;;  %s258_s25 = smov 3  ;;  %s236_s28 = smov 3 }
  0x15   :  { %v485_v50 = vld [vmem:[%s944_s0 + $0x7] ss:$16 sm:%s206_s12]   ;;  %s239_s30 = smov 12  ;;  %s244_s2 = smov 48  ;;  %v192_v54 = vsel %vm14_vm3, %v482_v47, %v187_v48  ;;  %v495_v56 = vld [vmem:[%s944_s0 + $0x86] ss:$16 sm:%s258_s25]  }
  0x16   :  { %v486_v51 = vld [vmem:[%s944_s0 + $0x7] ss:$16 sm:%s209_s16]   ;;  %s552_s8 = smov 70   ;;  %v491_v58 = vld [vmem:[%s944_s0 + $0x6] ss:$16 sm:%s236_s28]   ;;  %s249_s11 = smov 192 }
  0x17   :  { %v212_v52 = vsel %vm6_vm1, %v486_v51, %v485_v50  ;;  %v487_v53 = vld [vmem:[%s944_s0 + $0x7] ss:$16 sm:%s214_s17]   ;;  %s266_s12 = smov 3  ;;  %v492_v59 = vld [vmem:[%s944_s0 + $0x6] ss:$16 sm:%s239_s30]   ;;  %s269_s16 = smov 12 }
  0x18   :  { %163 = vrot.lane.b32.xlu0 %v162_v44, %s550_s26  ;;  %v488_v55 = vld [vmem:[%s944_s0 + $0x7] ss:$16 sm:%s219_s20]   ;;  %230 = vrot.lane.b32.xlu1 %v489_v49, %s552_s8  ;;  %v217_v57 = vsel %vm10_vm2, %v487_v53, %v212_v52  ;;  %v242_v61 = vsel %vm6_vm1, %v492_v59, %v491_v58  ;;  %s288_s17 = smov 3  ;;  %s553_s22 = smov 60  }
  0x19   :  { %v493_v60 = vld [vmem:[%s944_s0 + $0x6] ss:$16 sm:%s244_s2]   ;;  %v222_v62 = vsel %vm14_vm3, %v488_v55, %v217_v57  ;;  %v497_v0 = vld [vmem:[%s944_s0 + $0x5] ss:$16 sm:%s266_s12]   ;;  %s296_s25 = smov 3  ;;  %s299_s28 = smov 12 }
  0x1a   :  { %v494_v63 = vld [vmem:[%s944_s0 + $0x6] ss:$16 sm:%s249_s11]   ;;  %v247_v1 = vsel %vm10_vm2, %v493_v60, %v242_v61  ;;  %v498_v2 = vld [vmem:[%s944_s0 + $0x5] ss:$16 sm:%s269_s16]   ;;  %s279_s3 = smov 192  ;;  %s318_s4 = smov 3 }
  0x1b   :  { %v501_v3 = vld [vmem:[%s944_s0 + $0x85] ss:$16 sm:%s288_s17]   ;;  %v272_v4 = vsel %vm6_vm1, %v498_v2, %v497_v0  ;;  %s304_s5 = smov 48  ;;  %v252_v6 = vsel %vm14_vm3, %v494_v63, %v247_v1  ;;  %v503_v7 = vld [vmem:[%s944_s0 + $0x4] ss:$16 sm:%s296_s25]   ;;  %s326_s11 = smov 3 }
  0x1c   :  { %193 = vrot.lane.b32.xlu0 %v192_v54, %s551_s27  ;;  %s274_s27 = smov 48  ;;  %260 = vrot.lane.b32.xlu1 %v495_v56, %s553_s22  ;;  %v504_v8 = vld [vmem:[%s944_s0 + $0x4] ss:$16 sm:%s299_s28]   ;;  %s554_s12 = smov 50  }
  0x1d   :  { %v499_v5 = vld [vmem:[%s944_s0 + $0x5] ss:$16 sm:%s274_s27]   ;;  %s309_s15 = smov 192  ;;  %s329_s10 = smov 12  ;;  %v507_v11 = vld [vmem:[%s944_s0 + $0x84] ss:$16 sm:%s318_s4]   ;;  %v302_v12 = vsel %vm6_vm1, %v504_v8, %v503_v7 }
  0x1e   :  { %v277_v9 = vsel %vm10_vm2, %v499_v5, %v272_v4  ;;  %v500_v10 = vld [vmem:[%s944_s0 + $0x5] ss:$16 sm:%s279_s3]   ;;  %v505_v13 = vld [vmem:[%s944_s0 + $0x4] ss:$16 sm:%s304_s5]   ;;  %s348_s19 = smov 3  ;;  %s356_s23 = smov 3 }
  0x1f   :  { %v509_v14 = vld [vmem:[%s944_s0 + $0x3] ss:$16 sm:%s326_s11]   ;;  %v282_v15 = vsel %vm14_vm3, %v500_v10, %v277_v9  ;;  %v506_v16 = vld [vmem:[%s944_s0 + $0x4] ss:$16 sm:%s309_s15]   ;;  %s359_s29 = smov 12  ;;  %s555_s30 = smov 40   ;;  %v307_v18 = vsel %vm10_vm2, %v505_v13, %v302_v12 }
  0x20   :  { %223 = vrot.lane.b32.xlu0 %v222_v62, %s552_s8  ;;  %290 = vrot.lane.b32.xlu1 %v501_v3, %s554_s12  ;;  %v510_v17 = vld [vmem:[%s944_s0 + $0x3] ss:$16 sm:%s329_s10]   ;;  %s339_s4 = smov 192  ;;  %s378_s8 = smov 3  ;;  %v312_v24 = vsel %vm14_vm3, %v506_v16, %v307_v18 }
  0x21   :  { %v513_v19 = vld [vmem:[%s944_s0 + $0x83] ss:$16 sm:%s348_s19]   ;;  %v332_v20 = vsel %vm6_vm1, %v510_v17, %v509_v14  ;;  %v515_v22 = vld [vmem:[%s944_s0 + $0x2] ss:$16 sm:%s356_s23]   ;;  %s364_s13 = smov 48  ;;  %s386_s14 = smov 3 }
  0x22   :  { %v516_v23 = vld [vmem:[%s944_s0 + $0x2] ss:$16 sm:%s359_s29]   ;;  %v512_v25 = vld [vmem:[%s944_s0 + $0x3] ss:$16 sm:%s339_s4]   ;;  %s389_s16 = smov 12  ;;  %s556_s17 = smov 30  }
  0x23   :  { %v519_v27 = vld [vmem:[%s944_s0 + $0x82] ss:$16 sm:%s378_s8]   ;;  %s369_s19 = smov 192  ;;  %s408_s20 = smov 3  ;;  %v362_v28 = vsel %vm6_vm1, %v516_v23, %v515_v22  ;;  %v521_v30 = vld [vmem:[%s944_s0 + $0x1] ss:$16 sm:%s386_s14]  }
  0x24   :  { %253 = vrot.lane.b32.xlu0 %v252_v6, %s553_s22  ;;  %s334_s22 = smov 48  ;;  %320 = vrot.lane.b32.xlu1 %v507_v11, %s555_s30  ;;  %v517_v29 = vld [vmem:[%s944_s0 + $0x2] ss:$16 sm:%s364_s13]   ;;  %s394_s25 = smov 48 }
  0x25   :  { %v511_v21 = vld [vmem:[%s944_s0 + $0x3] ss:$16 sm:%s334_s22]   ;;  %s399_s28 = smov 192  ;;  %v522_v31 = vld [vmem:[%s944_s0 + $0x1] ss:$16 sm:%s389_s16]   ;;  %s416_s2 = smov 3  ;;  %v367_v34 = vsel %vm10_vm2, %v517_v29, %v362_v28 }
  0x26   :  { %v337_v26 = vsel %vm10_vm2, %v511_v21, %v332_v20  ;;  %v518_v33 = vld [vmem:[%s944_s0 + $0x2] ss:$16 sm:%s369_s19]   ;;  %s419_s5 = smov 12  ;;  %s424_s6 = smov 48  ;;  %v525_v35 = vld [vmem:[%s944_s0 + $0x81] ss:$16 sm:%s408_s20]   ;;  %v392_v36 = vsel %vm6_vm1, %v522_v31, %v521_v30 }
  0x27   :  { %v342_v32 = vsel %vm14_vm3, %v512_v25, %v337_v26  ;;  %s557_s8 = smov 20   ;;  %s19_s11 = smov 3  ;;  %v523_v37 = vld [vmem:[%s944_s0 + $0x1] ss:$16 sm:%s394_s25]   ;;  %v527_v38 = vld [vmem:[%s944_s0 + $0xd] ss:$16 sm:%s416_s2]   ;;  %v372_v41 = vsel %vm14_vm3, %v518_v33, %v367_v34 }
  0x28   :  { %283 = vrot.lane.b32.xlu0 %v282_v15, %s554_s12  ;;  %350 = vrot.lane.b32.xlu1 %v513_v19, %s556_s17  ;;  %s2_s12 = smov 3  ;;  %s4_s16 = smov 12  ;;  %v524_v39 = vld [vmem:[%s944_s0 + $0x1] ss:$16 sm:%s399_s28]   ;;  %v397_v46 = vsel %vm10_vm2, %v523_v37, %v392_v36 }
  0x29   :  { %v528_v40 = vld [vmem:[%s944_s0 + $0xd] ss:$16 sm:%s419_s5]   ;;  %s8_s20 = smov 48  ;;  %s12_s21 = smov 192  ;;  %v446_v44 = vld [vmem:[%s944_s0 + $0x80] ss:$16 sm:%s19_s11]   ;;  %v402_v53 = vsel %vm14_vm3, %v524_v39, %v397_v46 }
  0x2a   :  { %v529_v43 = vld [vmem:[%s944_s0 + $0xd] ss:$16 sm:%s424_s6]   ;;  %v3_v45 = vld [vmem:[%s944_s0] ss:$16 sm:%s2_s12]   ;;  %s558_s2 = smov 10   ;;  %v422_v48 = vsel %vm6_vm1, %v528_v40, %v527_v38  ;;  %s429_s7 = smov 192 }
  0x2b   :  { %447 = vst.msk [vmem:[%s945_s1 + $0x10] sm:$0x3] %vm16_vm4, %v446_v44   ;;  %v5_v47 = vld [vmem:[%s944_s0] ss:$16 sm:%s4_s16]   ;;  %v427_v55 = vsel %vm10_vm2, %v529_v43, %v422_v48 }
  0x2c   :  { %313 = vrot.lane.b32.xlu0 %v312_v24, %s555_s30  ;;  %s439_s30 = smov 3  ;;  %380 = vrot.lane.b32.xlu1 %v519_v27, %s557_s8  ;;  %v7_v49 = vsel %vm6_vm1, %v5_v47, %v3_v45  ;;  %v9_v50 = vld [vmem:[%s944_s0] ss:$16 sm:%s8_s20]   ;;  %vm405_vm1 = vcmask 162896  }
  0x2d   :  { %v532_v42 = vld [vmem:[%s944_s0 + $0x8d] ss:$16 sm:%s439_s30]   ;;  %v13_v51 = vld [vmem:[%s944_s0] ss:$16 sm:%s12_s21]   ;;  %v11_v52 = vsel %vm10_vm2, %v9_v50, %v7_v49  ;;  %vm435_vm2 = vcmask 97296  }
  0x2e   :  { %v15_v54 = vsel %vm14_vm3, %v13_v51, %v11_v52  ;;  %v530_v56 = vld [vmem:[%s944_s0 + $0xd] ss:$16 sm:%s429_s7]  }
  0x2f   :  { %17 = vst.msk [vmem:[%s945_s1] sm:$0xff] %vm16_vm4, %v15_v54   ;;  %v432_v57 = vsel %vm14_vm3, %v530_v56, %v427_v55 }
  0x30   :  { %343 = vrot.lane.b32.xlu0 %v342_v32, %s556_s17  ;;  %410 = vrot.lane.b32.xlu1 %v525_v35, %s558_s2 }
  0x34   :  { %373 = vrot.lane.b32.xlu0 %v372_v41, %s557_s8  ;;  %s559_s8 = smov 2  }
  0x35   :  { %441 = vrot.lane.b32.xlu1 %v532_v42, %s559_s8 }
  0x38   :  { %403 = vrot.lane.b32.xlu0 %v402_v53, %s558_s2 }
  0x3c   :  { %433 = vrot.lane.b32.xlu0 %v432_v57, %s559_s8 }
  0x74   :  { %v111_v58 = vpop.permute.xlu1 %110  }
  0x77   :  { %v78_v59 = vpop.permute.xlu0 %77  }
  0x78   :  { %459 = vst.msk [vmem:[%s945_s1 + $0x18] sm:$0x3] %vm64_vm5, %v78_v59  }
  0x79   :  { %460 = vst.msk [vmem:[%s945_s1 + $0x10] sm:$0x3] %vm67_vm6, %v78_v59  }
  0x7a   :  { %466 = vst.msk [vmem:[%s945_s1 + $0x10] sm:$0x3] %vm105_vm7, %v111_v58   ;;  %v104_v60 = vpop.permute.xlu1 %103  }
  0x7e   :  { %v141_v61 = vpop.permute.xlu1 %140  }
  0x7f   :  { %472 = vst.msk [vmem:[%s945_s1 + $0x10] sm:$0x3] %vm135_vm8, %v141_v61  }
  0x82   :  { %v63_v62 = vpop.permute.xlu0 %62   ;;  %v171_v63 = vpop.permute.xlu1 %170  }
  0x83   :  { %456 = vst.msk [vmem:[%s945_s1 + $0x8] sm:$0xff] %vm64_vm5, %v63_v62  }
  0x84   :  { %68 = vst.msk [vmem:[%s945_s1] sm:$0xff] %vm67_vm6, %v63_v62  }
  0x85   :  { %106 = vst.msk [vmem:[%s945_s1] sm:$0xff] %vm105_vm7, %v104_v60  }
  0x86   :  { %478 = vst.msk [vmem:[%s945_s1 + $0x10] sm:$0x3] %vm165_vm9, %v171_v63   ;;  %v134_v0 = vpop.permute.xlu0 %133   ;;  %v201_v1 = vpop.permute.xlu1 %200  }
  0x87   :  { %136 = vst.msk [vmem:[%s945_s1] sm:$0xff] %vm135_vm8, %v134_v0  }
  0x88   :  { %484 = vst.msk [vmem:[%s945_s1 + $0x10] sm:$0x3] %vm195_vm10, %v201_v1  }
  0x8a   :  { %v164_v2 = vpop.permute.xlu0 %163   ;;  %v231_v3 = vpop.permute.xlu1 %230  }
  0x8b   :  { %166 = vst.msk [vmem:[%s945_s1] sm:$0xff] %vm165_vm9, %v164_v2  }
  0x8c   :  { %490 = vst.msk [vmem:[%s945_s1 + $0x10] sm:$0x3] %vm225_vm11, %v231_v3  }
  0x8e   :  { %v194_v4 = vpop.permute.xlu0 %193   ;;  %v261_v5 = vpop.permute.xlu1 %260  }
  0x8f   :  { %196 = vst.msk [vmem:[%s945_s1] sm:$0xff] %vm195_vm10, %v194_v4  }
  0x90   :  { %496 = vst.msk [vmem:[%s945_s1 + $0x10] sm:$0x3] %vm255_vm12, %v261_v5  }
  0x92   :  { %v224_v6 = vpop.permute.xlu0 %223   ;;  %v291_v7 = vpop.permute.xlu1 %290  }
  0x93   :  { %226 = vst.msk [vmem:[%s945_s1] sm:$0xff] %vm225_vm11, %v224_v6  }
  0x94   :  { %502 = vst.msk [vmem:[%s945_s1 + $0x10] sm:$0x3] %vm285_vm13, %v291_v7  }
  0x96   :  { %v254_v8 = vpop.permute.xlu0 %253   ;;  %v321_v9 = vpop.permute.xlu1 %320  }
  0x97   :  { %256 = vst.msk [vmem:[%s945_s1] sm:$0xff] %vm255_vm12, %v254_v8  }
  0x98   :  { %508 = vst.msk [vmem:[%s945_s1 + $0x10] sm:$0x3] %vm315_vm14, %v321_v9  }
  0x9a   :  { %v284_v10 = vpop.permute.xlu0 %283   ;;  %v351_v11 = vpop.permute.xlu1 %350  }
  0x9b   :  { %286 = vst.msk [vmem:[%s945_s1] sm:$0xff] %vm285_vm13, %v284_v10  }
  0x9c   :  { %514 = vst.msk [vmem:[%s945_s1 + $0x10] sm:$0x3] %vm345_vm15, %v351_v11  }
  0x9e   :  { %v314_v12 = vpop.permute.xlu0 %313   ;;  %v381_v13 = vpop.permute.xlu1 %380  }
  0x9f   :  { %316 = vst.msk [vmem:[%s945_s1] sm:$0xff] %vm315_vm14, %v314_v12  }
  0xa0   :  { %520 = vst.msk [vmem:[%s945_s1 + $0x10] sm:$0x3] %vm375_vm0, %v381_v13  }
  0xa2   :  { %v344_v14 = vpop.permute.xlu0 %343   ;;  %v411_v15 = vpop.permute.xlu1 %410  }
  0xa3   :  { %346 = vst.msk [vmem:[%s945_s1] sm:$0xff] %vm345_vm15, %v344_v14  }
  0xa4   :  { %526 = vst.msk [vmem:[%s945_s1 + $0x10] sm:$0x3] %vm405_vm1, %v411_v15  }
  0xa6   :  { %v374_v16 = vpop.permute.xlu0 %373  }
  0xa7   :  { %376 = vst.msk [vmem:[%s945_s1] sm:$0xff] %vm375_vm0, %v374_v16   ;;  %v442_v17 = vpop.permute.xlu1 %441  }
  0xa8   :  { %533 = vst.msk [vmem:[%s945_s1 + $0x18] sm:$0x3] %vm435_vm2, %v442_v17  }
  0xaa   :  { %v404_v18 = vpop.permute.xlu0 %403  }
  0xab   :  { %406 = vst.msk [vmem:[%s945_s1] sm:$0xff] %vm405_vm1, %v404_v18  }
  0xae   :  { %v434_v19 = vpop.permute.xlu0 %433  }
  0xaf   :  { %531 = vst.msk [vmem:[%s945_s1 + $0x8] sm:$0xff] %vm435_vm2, %v434_v19  }

// kernel: simple_net_forward.1
= control target key start
LH: loop header
LB: loop body
LE: loop exit
PB: predicated region body
PF: predicated region fallthrough
CT: control target
= control target key end

     0   :  { %15 = vsyncpa [#allocation3], 0  ;;  %s2728_s0 = inlined_call_operand.vmem [shape: bf16[2,112,90], index: 0, kind: input, shape index: {}]   ;;  %s2729_s1 = inlined_call_operand.vmem [shape: bf16[90,224], index: 1, kind: input, shape index: {}]   ;;  %s2730_s2 = inlined_call_operand.vmem [shape: f32[1,224], index: 2, kind: input, shape index: {}]   ;;  %s2731_s3 = inlined_call_operand.vmem [shape: bf16[2,56,112], index: 3, kind: input, shape index: {}]   ;;  %s2732_s4 = inlined_call_operand.vmem [shape: bf16[2,224,112], index: 4, kind: input, shape index: {}]   ;;  %s2733_s5 = inlined_call_operand.vmem [shape: bf16[112,140], index: 5, kind: input, shape index: {}]   ;;  %s2734_s6 = inlined_call_operand.vmem [shape: f32[56,140], index: 6, kind: input, shape index: {}]   ;;  %s2735_s7 = inlined_call_operand.vmem [shape: f32[4,56], index: 7, kind: input, shape index: {}]   ;;  %s2736_s8 = inlined_call_operand.vmem [shape: f32[140,10], index: 8, kind: input, shape index: {}]   ;;  %s2737_s9 = inlined_call_operand.vmem [shape: f32[1,10], index: 9, kind: input, shape index: {}]   ;;  %s2738_s10 = inlined_call_operand.hbm [shape: f32[2,4,10], index: 10, kind: output, shape index: {}]  }
   0x1   :  { %17 = vsyncpa [#allocation3 + $0x1], 0  ;;  %s2181_s13 = smov 0   ;;  %s2183_s14 = smov 0  }
   0x2   :  { %s2185_s15 = smov 0   ;;  %s2187_s16 = smov 0  }
   0x3 LB: > { %s2202_s17 = sadd.s32 4294967295, %s2119_s16   ;;  %s1741_s18 = sadd.s32 4294967294, %s2119_s16   ;;  %s2119_s16 = sphi %s2187_s16, %s2746_s16   ;;  %s2115_s15 = sphi %s2185_s15, %s2745_s15   ;;  %s2111_s14 = sphi %s2183_s14, %s2744_s14   ;;  %s2107_s13 = sphi %s2181_s13, %s2743_s13  }
   0x4   : > { %s2206_s19 = sadd.s32 1, %s2119_s16   ;;  %s245_s20 = sadd.s32 1, %s2115_s15 }
   0x5   : > { %s242_s21 = ssub.s32 %s2119_s16, %s2206_s19  ;;  %p255_p0 = scmp.ne.s32.totalorder %s2115_s15, %s2111_s14 }
   0x6   : > { %p243_p1 = scmp.eq.s32.totalorder %s242_s21, 0  ;;  %p256_p2 = scmp.eq.s32.totalorder %s2202_s17, 1 }
   0x7   : > { %p261_p3 = scmp.ne.s32.totalorder %s2111_s14, %s2107_s13  ;;  %p262_p4 = scmp.eq.s32.totalorder %s1741_s18, 1 }
   0x8   : > { %s2217_s22 = scalar_select %p243_p1, %s2115_s15, %s245_s20  }
   0x9   : > { %p2219_p5 = por %p256_p2, %p255_p0  ;;  %p2223_p6 = por %p262_p4, %p261_p3 }
   0xa   : > { %2739 = sst [smem:[#allocation5_spill]] %s2217_s22  ;;  %p1744_p7 = scmp.ge.s32.totalorder %s2119_s16, 1 }
   0xb   : > { %p315_p8 = scmp.lt.s32.totalorder %s2119_s16, 3 }
   0xd   : > { %p316_p9 = pnand %p1744_p7, %p315_p8 }
   0xe   : > { %v1971_v0 = vld [vmem:[%s2729_s1 + $0x4] ss:$8 sps:$4 sm:$0xff] (!%p316_p9)   ;;  %v1973_v1 = vld [vmem:[%s2729_s1] ss:$8 sps:$4 sm:$0xff] (!%p316_p9)   ;;  %v2121_v2 = vmov (!%p316_p9), 0   ;;  %p353_p10 = scmp.lt.s32.totalorder (!%p316_p9), %s2202_s17, 1  ;;  %v387_v21 = vlaneseq (!%p316_p9) }
   0xf   : > { %319 = sbr.rel (%p316_p9) target bundleno = 1780 (0x6f4), region = 60  ;;  %551 = vmatprep.mubr.bf16.mxu0 (!%p316_p9), %v2121_v2  ;;  %734 = vmatprep.mubr.bf16.mxu1 (!%p316_p9), %v2121_v2  ;;  %v1974_v3 = vld [vmem:[%s2729_s1 + $0x14] ss:$8 sps:$4 sm:$0xff] (!%p316_p9)   ;;  %v1976_v4 = vld [vmem:[%s2729_s1 + $0x10] ss:$8 sps:$4 sm:$0xff] (!%p316_p9)   ;;  %vm512_vm0 = vcmask (!%p316_p9), 1044480  }
  0x10   : > { %519 = vmatprep.subr.bf16.mxu0 (!%p316_p9), %v1971_v0  ;;  %v1977_v5 = vld [vmem:[%s2729_s1 + $0x24] ss:$8 sps:$4 sm:$0xff] (!%p316_p9)   ;;  %v1979_v6 = vld [vmem:[%s2729_s1 + $0x20] ss:$8 sps:$4 sm:$0xff] (!%p316_p9)   ;;  %v1980_v7 = vld [vmem:[%s2729_s1 + $0x34] ss:$8 sps:$4 sm:$0xff] (!%p316_p9)  }
  0x11   : > { %520 = vmatpush1.bf16.msra.mxu0 (!%p316_p9), %v1973_v1  ;;  %v1988_v8 = vld [vmem:[%s2729_s1 + $0x50] ss:$8 sps:$4 sm:$0x1f] (!%p316_p9)   ;;  %v1983_v10 = vld [vmem:[%s2729_s1 + $0x44] ss:$8 sps:$4 sm:$0xff] (!%p316_p9)   ;;  %vm490_vm1 = vcmask (!%p316_p9), 736256  }
  0x12   : > { %521 = vmatprep.subr.bf16.mxu0 (!%p316_p9), %v1974_v3  ;;  %v1982_v9 = vld [vmem:[%s2729_s1 + $0x30] ss:$8 sps:$4 sm:$0xff] (!%p316_p9)   ;;  %v1985_v11 = vld [vmem:[%s2729_s1 + $0x40] ss:$8 sps:$4 sm:$0xff] (!%p316_p9)   ;;  %v514_v13 = vsel (!%p316_p9), %vm512_vm0, %v1988_v8, 0  ;;  %v388_v22 = vshrl.u32 (!%p316_p9), %v387_v21, 7 }
  0x13   : > { %v1986_v12 = vld [vmem:[%s2729_s1 + $0x54] ss:$8 sps:$4 sm:$0x1f] (!%p316_p9)   ;;  %v2004_v23 = vld [vmem:[%s2732_s4] sm:$0xff] (!%p316_p9)   ;;  %v2006_v24 = vld [vmem:[%s2732_s4 + $0x8] sm:$0xff] (!%p316_p9)   ;;  %vm689_vm2 = vcmask (!%p316_p9), 916480  }
  0x14   : > { %v389_v25 = vsub.s32 (!%p316_p9), 0, %v388_v22  ;;  %v385_v26 = vld [vmem:[%s2730_s2] sm:$0x3] (!%p316_p9)  ;;  %v393_v27 = vsub.s32 (!%p316_p9), 1, %v388_v22  ;;  %v2008_v28 = vld [vmem:[%s2732_s4 + $0x10] sm:$0xff] (!%p316_p9)   ;;  %v2010_v32 = vld [vmem:[%s2732_s4 + $0x18] sm:$0xff] (!%p316_p9)  }
  0x15   : > { %522 = vmatpush1.bf16.msra.mxu0 (!%p316_p9), %v1976_v4  ;;  %vm1016_vm3 = vcmask (!%p316_p9), 785408   ;;  %vm1477_vm4 = vcmask (!%p316_p9), 457728   ;;  %vm1581_vm5 = vcmask (!%p316_p9), 1043456   ;;  %vm2124_vm6 = vmmov (!%p316_p9), 1   ;;  %s350_s20 = sand.u32 (!%p316_p9), 1, %s2111_s14   ;;  %s1884_s21 = sshll.u32 (!%p316_p9), %s2202_s17, 6 }
  0x16   : > { %s354_s18 = scalar_select %p353_p10, %s2202_s17, 1  ;;  %523 = vmatprep.subr.bf16.mxu0 %v1977_v5  ;;  %v2308_v29 = vrot.slane %v385_v26, %v389_v25  ;;  %v2311_v30 = vrot.slane %v385_v26, %v393_v27  ;;  %vm1925_vm7 = vmpackc.low %vm1581_vm5, %vm2124_vm6  ;;  %vm1577_vm8 = vcmask 97280   ;;  %vm1655_vm9 = vcmask 76800  }
  0x17   : > { %s2685_s28 = scalar_lea.hbm %s2738_s10, %s1884_s21  ;;  %s1669_s22 = scalar_lea.sflag [#allocation3], %s350_s20 }
  0x18   : > { %s1927_s25 = smul.u32 56, %s354_s18  ;;  %s1745_s18 = sshll.u32 %s350_s20, 2 }
  0x19   : > { %524 = vmatpush1.bf16.msra.mxu0 %v1979_v6  ;;  %s2125_s17 = smov [#allocation2]  }
  0x1a   : > { %s2254_s30 = scalar_lea.vmem %s2728_s0, %s1927_s25  ;;  %525 = vmatprep.subr.bf16.mxu0 %v1980_v7  ;;  %s352_s25 = scalar_lea.vmem [#allocation2], %s1745_s18 }
  0x1b   : > { %v1989_v14 = vld [vmem:[%s2254_s30] sm:$0xff]   ;;  %v1990_v15 = vld [vmem:[%s2254_s30 + $0x8] sm:$0xff]   ;;  %v1991_v16 = vld [vmem:[%s2254_s30 + $0x10] sm:$0xff]   ;;  %s2061_s11 = sshll.u32 %s2125_s17, 4  ;;  %s2062_s11 = int_to_ptr.vmem [resolvable:$false] %s2061_s11 }
  0x1c   : > { %v1992_v17 = vld [vmem:[%s2254_s30 + $0x18] sm:$0xff]   ;;  %v1993_v18 = vld [vmem:[%s2254_s30 + $0x20] sm:$0xff]   ;;  %v1994_v19 = vld [vmem:[%s2254_s30 + $0x28] sm:$0xff]   ;;  %s2063_s12 = scalar_lea.vmem %s2062_s11, 128 }
  0x1d   : > { %526 = vmatpush1.bf16.msra.mxu0 %v1982_v9  ;;  %v1995_v20 = vld [vmem:[%s2254_s30 + $0x30] sm:$0xff]   ;;  %s1682_s30 = sshll.u32 %s352_s25, 4  ;;  %s2687_s30 = int_to_ptr.vmem [resolvable:$true] %s1682_s30 }
  0x1e   : > { %527 = vmatprep.subr.bf16.mxu0 %v1983_v10  ;;  %s2057_s29 = scalar_lea.vmem %s2687_s30, 64  ;;  %p2064_p0 = scmp.lt.s32.totalorder %s2687_s30, %s2062_s11 }
  0x1f   : > { %p2058_p11 = scmp.ne.s32.totalorder %s2687_s30, %s2057_s29  ;;  %p2065_p1 = scmp.lt.s32.totalorder %s2063_s12, %s2057_s29 }
  0x21   : > { %528 = vmatpush1.bf16.msra.mxu0 %v1985_v11  ;;  %p2059_p12 = pnand %p2058_p11, %p2219_p5  ;;  %p2066_p2 = por %p2065_p1, %p2064_p0 }
  0x22   : > { %1766 = vmatprep.subr.msk.bf16.mxu0 %vm512_vm0, %v1986_v12 }
  0x23   : > { %p2060_p13 = pneg %p2059_p12 }
  0x25   : > { %530 = vmatpush1.bf16.msra.mxu0 %v514_v13  ;;  %p2067_p3 = pnand %p2066_p2, %p2060_p13 }
  0x26   : > { %1029 = vmatprep.subr.bf16.mxu0 %v2121_v2 }
  0x28   : > { %1767 = vmatmul.mubr.msk.bf16.vlgmr.msra.gmra.mrb[0].mxu0 %vm490_vm1, %v1989_v14 }
  0x29   : > { %561 = vmatprep.mubr.bf16.mxu0 %v2121_v2  ;;  %1030 = vmatpush1.bf16.msra.mxu0 %v2004_v23 }
  0x2a   : > { %1031 = vmatprep.subr.bf16.mxu0 %v2121_v2 }
  0x2d   : > { %1032 = vmatpush1.bf16.msra.mxu0 %v2006_v24 }
  0x2e   : > { %1033 = vmatprep.subr.bf16.mxu0 %v2121_v2 }
  0x30   : > { %1768 = vmatmul.mubr.msk.bf16.gmra.mrb[4].mxu0 %vm490_vm1, %v1990_v15 }
  0x31   : > { %571 = vmatprep.mubr.bf16.mxu0 %v2121_v2  ;;  %1034 = vmatpush1.bf16.msra.mxu0 %v2008_v28 }
  0x32   : > { %1035 = vmatprep.subr.bf16.mxu0 %v2121_v2 }
  0x35   : > { %1036 = vmatpush1.bf16.msra.mxu0 %v2010_v32 }
  0x36   : > { %1037 = vmatprep.subr.bf16.mxu0 %v2121_v2 }
  0x38   : > { %1769 = vmatmul.mubr.msk.bf16.gmra.mrb[8].mxu0 %vm490_vm1, %v1991_v16 }
  0x39   : > { %581 = vmatprep.mubr.bf16.mxu0 %v2121_v2 }
  0x40   : > { %1770 = vmatmul.mubr.msk.bf16.gmra.mrb[12].mxu0 %vm490_vm1, %v1992_v17 }
  0x41   : > { %591 = vmatprep.mubr.bf16.mxu0 %v2121_v2 }
  0x48   : > { %1771 = vmatmul.mubr.msk.bf16.gmra.mrb[16].mxu0 %vm490_vm1, %v1993_v18 }
  0x49   : > { %601 = vmatprep.mubr.bf16.mxu0 %v2121_v2 }
  0x50   : > { %1772 = vmatmul.mubr.msk.bf16.gmra.mrb[20].mxu0 %vm490_vm1, %v1994_v19 }
  0x51   : > { %611 = vmatprep.mubr.bf16.mxu0 %v2121_v2 }
  0x58   : > { %1773 = vmatmul.mubr.msk.bf16.gmra.mrb[24].mxu0 %vm490_vm1, %v1995_v20 }
  0xfb   : > { %v553_v31 = vpop.f32.mrb[0].mxu0 }
  0xfc   : > { %v554_v33 = vadd.f32 %v553_v31, %v2308_v29  ;;  %v555_v34 = vpop.f32.mrb[1].mxu0 }
  0xfd   : > { %v556_v35 = vadd.f32 %v555_v34, %v2311_v30  ;;  %v557_v36 = vpop.f32.mrb[2].mxu0 }
  0xfe   : > { %v558_v37 = vadd.f32 %v557_v36, %v2308_v29  ;;  %v559_v38 = vpop.f32.mrb[3].mxu0  ;;  %v622_v40 = vmax.f32 %v554_v33, 0.0 }
  0xff   : > { %v560_v39 = vadd.f32 %v559_v38, %v2311_v30  ;;  %v623_v42 = vmax.f32 %v556_v35, 0.0 }
 0x100   : > { %v624_v41 = vmax.f32 %v558_v37, 0.0 }
 0x101   : > { %v625_v43 = vmax.f32 %v560_v39, 0.0 }
 0x102   : > { %v2322_v44 = vpack.c.bf16 %v624_v41, %v622_v40 }
 0x103   : > { %v563_v45 = vpop.f32.mrb[4].mxu0  ;;  %v2324_v46 = vpack.c.bf16 %v625_v43, %v623_v42 }
 0x104   : > { %v564_v47 = vadd.f32 %v563_v45, %v2308_v29  ;;  %v565_v48 = vpop.f32.mrb[5].mxu0 }
 0x105   : > { %v566_v49 = vadd.f32 %v565_v48, %v2311_v30  ;;  %v567_v50 = vpop.f32.mrb[6].mxu0  ;;  %702 = vmatprep.subr.bf16.mxu1 %v2324_v46 }
 0x106   : > { %v568_v51 = vadd.f32 %v567_v50, %v2308_v29  ;;  %v569_v52 = vpop.f32.mrb[7].mxu0  ;;  %703 = vmatpush1.bf16.msra.mxu1 %v2322_v44  ;;  %v626_v54 = vmax.f32 %v564_v47, 0.0 }
 0x107   : > { %v570_v53 = vadd.f32 %v569_v52, %v2311_v30  ;;  %v627_v56 = vmax.f32 %v566_v49, 0.0 }
 0x108   : > { %v628_v55 = vmax.f32 %v568_v51, 0.0 }
 0x109   : > { %v629_v57 = vmax.f32 %v570_v53, 0.0 }
 0x10a   : > { %v2332_v58 = vpack.c.bf16 %v628_v55, %v626_v54 }
 0x10b   : > { %v2334_v59 = vpack.c.bf16 %v629_v57, %v627_v56  ;;  %v573_v60 = vpop.f32.mrb[8].mxu0 }
 0x10c   : > { %v574_v61 = vadd.f32 %v573_v60, %v2308_v29  ;;  %v575_v62 = vpop.f32.mrb[9].mxu0 }
 0x10d   : > { %v576_v63 = vadd.f32 %v575_v62, %v2311_v30  ;;  %v577_v0 = vpop.f32.mrb[10].mxu0  ;;  %704 = vmatprep.subr.bf16.mxu1 %v2334_v59 }
 0x10e   : > { %v578_v1 = vadd.f32 %v577_v0, %v2308_v29  ;;  %v579_v3 = vpop.f32.mrb[11].mxu0  ;;  %705 = vmatpush1.bf16.msra.mxu1 %v2332_v58  ;;  %v630_v5 = vmax.f32 %v574_v61, 0.0 }
 0x10f   : > { %v580_v4 = vadd.f32 %v579_v3, %v2311_v30  ;;  %v631_v7 = vmax.f32 %v576_v63, 0.0 }
 0x110   : > { %v632_v6 = vmax.f32 %v578_v1, 0.0 }
 0x111   : > { %v633_v8 = vmax.f32 %v580_v4, 0.0 }
 0x112   : > { %v2342_v9 = vpack.c.bf16 %v632_v6, %v630_v5 }
 0x113   : > { %v2344_v10 = vpack.c.bf16 %v633_v8, %v631_v7  ;;  %v583_v11 = vpop.f32.mrb[12].mxu0 }
 0x114   : > { %v584_v12 = vadd.f32 %v583_v11, %v2308_v29  ;;  %v585_v13 = vpop.f32.mrb[13].mxu0 }
 0x115   : > { %v586_v14 = vadd.f32 %v585_v13, %v2311_v30  ;;  %v587_v15 = vpop.f32.mrb[14].mxu0  ;;  %706 = vmatprep.subr.bf16.mxu1 %v2344_v10  ;;  %v2011_v13 = vld [vmem:[%s2732_s4 + $0x88] sm:$0xff]  }
 0x116   : > { %v588_v16 = vadd.f32 %v587_v15, %v2308_v29  ;;  %v589_v17 = vpop.f32.mrb[15].mxu0  ;;  %707 = vmatpush1.bf16.msra.mxu1 %v2342_v9  ;;  %v634_v19 = vmax.f32 %v584_v12, 0.0  ;;  %v1996_v12 = vld [vmem:[%s2731_s3] sm:$0xff]   ;;  %v2003_v15 = vld [vmem:[%s2731_s3 + $0x34] ss:$0 sps:$4 sm:$0xff]  }
 0x117   : > { %v590_v18 = vadd.f32 %v589_v17, %v2311_v30  ;;  %v635_v21 = vmax.f32 %v586_v14, 0.0  ;;  %v2002_v14 = vld [vmem:[%s2731_s3 + $0x2c] sm:$0xff]  }
 0x118   : > { %v636_v20 = vmax.f32 %v588_v16, 0.0  ;;  %v2012_v16 = vld [vmem:[%s2732_s4 + $0x20] sm:$0xff]   ;;  %v2013_v17 = vld [vmem:[%s2732_s4 + $0x90] sm:$0xff]  }
 0x119   : > { %v637_v22 = vmax.f32 %v590_v18, 0.0  ;;  %1038 = vmatpush1.bf16.msra.mxu0 %v2012_v16  ;;  %v2014_v18 = vld [vmem:[%s2732_s4 + $0x28] sm:$0xff]  }
 0x11a   : > { %v2352_v23 = vpack.c.bf16 %v636_v20, %v634_v19  ;;  %1039 = vmatprep.subr.bf16.mxu0 %v2121_v2  ;;  %v2015_v19 = vld [vmem:[%s2732_s4 + $0x98] sm:$0xff]   ;;  %v2016_v20 = vld [vmem:[%s2732_s4 + $0x30] sm:$0xff]  }
 0x11b   : > { %v2354_v24 = vpack.c.bf16 %v637_v22, %v635_v21  ;;  %v593_v25 = vpop.f32.mrb[16].mxu0  ;;  %v2017_v21 = vld [vmem:[%s2732_s4 + $0xa0] sm:$0xff]   ;;  %v2018_v22 = vld [vmem:[%s2732_s4 + $0x38] sm:$0xff]  }
 0x11c   : > { %v594_v26 = vadd.f32 %v593_v25, %v2308_v29  ;;  %v595_v27 = vpop.f32.mrb[17].mxu0  ;;  %v2021_v25 = vld [vmem:[%s2732_s4 + $0xb0] sm:$0xff]  }
 0x11d   : > { %v596_v28 = vadd.f32 %v595_v27, %v2311_v30  ;;  %v597_v31 = vpop.f32.mrb[18].mxu0  ;;  %708 = vmatprep.subr.bf16.mxu1 %v2354_v24  ;;  %1040 = vmatpush1.bf16.msra.mxu0 %v2014_v18  ;;  %v2023_v27 = vld [vmem:[%s2732_s4 + $0xb8] sm:$0xff]  }
 0x11e   : > { %v598_v32 = vadd.f32 %v597_v31, %v2308_v29  ;;  %v599_v33 = vpop.f32.mrb[19].mxu0  ;;  %709 = vmatpush1.bf16.msra.mxu1 %v2352_v23  ;;  %v638_v35 = vmax.f32 %v594_v26, 0.0  ;;  %1041 = vmatprep.subr.bf16.mxu0 %v2121_v2  ;;  %v2022_v26 = vld [vmem:[%s2732_s4 + $0x48] sm:$0xff]   ;;  %v2025_v31 = vld [vmem:[%s2732_s4 + $0xc0] sm:$0xff]  }
 0x11f   : > { %v600_v34 = vadd.f32 %v599_v33, %v2311_v30  ;;  %v639_v37 = vmax.f32 %v596_v28, 0.0  ;;  %v2024_v28 = vld [vmem:[%s2732_s4 + $0x50] sm:$0xff]   ;;  %v2027_v33 = vld [vmem:[%s2732_s4 + $0xc8] sm:$0xff]  }
 0x120   : > { %v640_v36 = vmax.f32 %v598_v32, 0.0  ;;  %v2026_v32 = vld [vmem:[%s2732_s4 + $0x58] sm:$0xff]  }
 0x121   : > { %v641_v38 = vmax.f32 %v600_v34, 0.0  ;;  %1042 = vmatpush1.bf16.msra.mxu0 %v2016_v20  ;;  %v2028_v34 = vld [vmem:[%s2732_s4 + $0x60] sm:$0xff]  }
 0x122   : > { %v658_v39 = vpack.c.bf16 %v640_v36, %v638_v35  ;;  %1043 = vmatprep.subr.bf16.mxu0 %v2121_v2  ;;  %v2029_v35 = vld [vmem:[%s2732_s4 + $0xd0] sm:$0xff]   ;;  %v2030_v36 = vld [vmem:[%s2732_s4 + $0x68] sm:$0xff]  }
 0x123   : > { %v659_v40 = vpack.c.bf16 %v641_v38, %v639_v37  ;;  %v603_v41 = vpop.f32.mrb[20].mxu0  ;;  %v2031_v37 = vld [vmem:[%s2732_s4 + $0xd8] sm:$0xff]   ;;  %v2034_v38 = vld [vmem:[%s2733_s5 + $0x4] ss:$8 sps:$4 sm:$0xff]  }
 0x124   : > { %v604_v42 = vadd.f32 %v603_v41, %v2308_v29  ;;  %v605_v43 = vpop.f32.mrb[21].mxu0 }
 0x125   : > { %v606_v45 = vadd.f32 %v605_v43, %v2311_v30  ;;  %v607_v47 = vpop.f32.mrb[22].mxu0  ;;  %710 = vmatprep.subr.bf16.mxu1 %v659_v40  ;;  %1044 = vmatpush1.bf16.msra.mxu0 %v2018_v22 }
 0x126   : > { %v608_v48 = vadd.f32 %v607_v47, %v2308_v29  ;;  %v609_v49 = vpop.f32.mrb[23].mxu0  ;;  %711 = vmatpush1.bf16.msra.mxu1 %v658_v39  ;;  %v642_v51 = vmax.f32 %v604_v42, 0.0  ;;  %1045 = vmatprep.subr.bf16.mxu0 %v2121_v2 }
 0x127   : > { %v610_v50 = vadd.f32 %v609_v49, %v2311_v30  ;;  %v643_v53 = vmax.f32 %v606_v45, 0.0 }
 0x128   : > { %v644_v52 = vmax.f32 %v608_v48, 0.0 }
 0x129   : > { %v645_v54 = vmax.f32 %v610_v50, 0.0 }
 0x12a   : > { %v660_v55 = vpack.c.bf16 %v644_v52, %v642_v51 }
 0x12b   : > { %v661_v56 = vpack.c.bf16 %v645_v54, %v643_v53  ;;  %v613_v57 = vpop.f32.mrb[24].mxu0 }
 0x12c   : > { %v614_v60 = vadd.f32 %v613_v57, %v2308_v29  ;;  %v615_v61 = vpop.f32.mrb[25].mxu0 }
 0x12d   : > { %v616_v62 = vadd.f32 %v615_v61, %v2311_v30  ;;  %v617_v63 = vpop.f32.mrb[26].mxu0  ;;  %712 = vmatprep.subr.bf16.mxu1 %v661_v56 }
 0x12e   : > { %v618_v0 = vadd.f32 %v617_v63, %v2308_v29  ;;  %v619_v1 = vpop.f32.mrb[27].mxu0  ;;  %713 = vmatpush1.bf16.msra.mxu1 %v660_v55  ;;  %v646_v4 = vmax.f32 %v614_v60, 0.0  ;;  %v1997_v29 = vld [vmem:[%s2731_s3 + $0x8] sm:$0xff]  }
 0x12f   : > { %v620_v3 = vadd.f32 %v619_v1, %v2311_v30  ;;  %v647_v6 = vmax.f32 %v616_v62, 0.0  ;;  %v1998_v30 = vld [vmem:[%s2731_s3 + $0x10] sm:$0xff]  }
 0x130   : > { %v648_v5 = vmax.f32 %v618_v0, 0.0 }
 0x131   : > { %v649_v7 = vmax.f32 %v620_v3, 0.0 }
 0x132   : > { %v662_v8 = vpack.c.bf16 %v648_v5, %v646_v4 }
 0x133   : > { %v663_v11 = vpack.c.bf16 %v649_v7, %v647_v6  ;;  %v2032_v6 = vld [vmem:[%s2733_s5] ss:$8 sps:$4 sm:$0xff]   ;;  %v2037_v7 = vld [vmem:[%s2733_s5 + $0x14] ss:$8 sps:$4 sm:$0xff]  }
 0x135   : > { %714 = vmatprep.subr.bf16.mxu1 %v663_v11 }
 0x136   : > { %715 = vmatpush1.bf16.msra.mxu1 %v662_v8 }
 0x137   : > { %811 = vmatprep.subr.bf16.mxu1 %v2324_v46  ;;  %v2000_v46 = vld [vmem:[%s2731_s3 + $0x1c] sm:$0xff]  }
 0x139   : > { %1778 = vmatmul.mubr.msk.bf16.vlgmr.msra.gmra.mrb[0].mxu1 %vm689_vm2, %v1996_v12 }
 0x13a   : > { %812 = vmatpush1.bf16.msra.mxu1 %v2322_v44  ;;  %744 = vmatprep.mubr.bf16.mxu1 %v2121_v2  ;;  %v1999_v44 = vld [vmem:[%s2731_s3 + $0x18] ss:$0 sps:$4 sm:$0xff]  }
 0x13b   : > { %813 = vmatprep.subr.bf16.mxu1 %v2334_v59  ;;  %v2007_v59 = vld [vmem:[%s2732_s4 + $0x78] sm:$0xff]  }
 0x13e   : > { %814 = vmatpush1.bf16.msra.mxu1 %v2332_v58  ;;  %v2005_v58 = vld [vmem:[%s2732_s4 + $0x70] sm:$0xff]  }
 0x13f   : > { %815 = vmatprep.subr.bf16.mxu1 %v2344_v10  ;;  %v2009_v10 = vld [vmem:[%s2732_s4 + $0x80] sm:$0xff]  }
 0x141   : > { %1779 = vmatmul.mubr.msk.bf16.gmra.mrb[4].mxu1 %vm689_vm2, %v1997_v29 }
 0x142   : > { %816 = vmatpush1.bf16.msra.mxu1 %v2342_v9  ;;  %754 = vmatprep.mubr.bf16.mxu1 %v2121_v2  ;;  %v2001_v9 = vld [vmem:[%s2731_s3 + $0x24] sm:$0xff]  }
 0x143   : > { %817 = vmatprep.subr.bf16.mxu1 %v2354_v24  ;;  %v2020_v24 = vld [vmem:[%s2732_s4 + $0x40] sm:$0xff]  }
 0x144   : > { %1046 = vmatpush1.bf16.msra.mxu0 %v2020_v24  ;;  %v2046_v24 = vld [vmem:[%s2733_s5 + $0x44] ss:$8 sps:$4 sm:$0xff]  }
 0x145   : > { %1047 = vmatprep.subr.bf16.mxu0 %v2121_v2 }
 0x146   : > { %818 = vmatpush1.bf16.msra.mxu1 %v2352_v23  ;;  %v2019_v23 = vld [vmem:[%s2732_s4 + $0xa8] sm:$0xff]  }
 0x147   : > { %819 = vmatprep.subr.bf16.mxu1 %v659_v40 }
 0x148   : > { %1048 = vmatpush1.bf16.msra.mxu0 %v2022_v26 }
 0x149   : > { %1780 = vmatmul.mubr.msk.bf16.gmra.mrb[8].mxu1 %vm689_vm2, %v1998_v30  ;;  %1049 = vmatprep.subr.bf16.mxu0 %v2121_v2 }
 0x14a   : > { %820 = vmatpush1.bf16.msra.mxu1 %v658_v39  ;;  %764 = vmatprep.mubr.bf16.mxu1 %v2121_v2 }
 0x14b   : > { %821 = vmatprep.subr.bf16.mxu1 %v661_v56 }
 0x14c   : > { %1050 = vmatpush1.bf16.msra.mxu0 %v2024_v28  ;;  %v2044_v28 = vld [vmem:[%s2733_s5 + $0x40] ss:$8 sps:$4 sm:$0xff]  }
 0x14d   : > { %1051 = vmatprep.subr.bf16.mxu0 %v2121_v2 }
 0x14e   : > { %822 = vmatpush1.bf16.msra.mxu1 %v660_v55 }
 0x14f   : > { %823 = vmatprep.subr.bf16.mxu1 %v663_v11 }
 0x150   : > { %1052 = vmatpush1.bf16.msra.mxu0 %v2026_v32 }
 0x151   : > { %1781 = vmatmul.mubr.msk.bf16.gmra.mrb[12].mxu1 %vm689_vm2, %v1999_v44  ;;  %1053 = vmatprep.subr.bf16.mxu0 %v2121_v2  ;;  %v2035_v44 = vld [vmem:[%s2733_s5 + $0x10] ss:$8 sps:$4 sm:$0xff]  }
 0x152   : > { %824 = vmatpush1.bf16.msra.mxu1 %v662_v8  ;;  %843 = vmatprep.mubr.bf16.mxu1 %v2121_v2 }
 0x153   : > { %1206 = vmatprep.subr.bf16.mxu1 %v2121_v2 }
 0x154   : > { %1054 = vmatpush1.bf16.msra.mxu0 %v2028_v34 }
 0x155   : > { %1055 = vmatprep.subr.bf16.mxu0 %v2121_v2 }
 0x158   : > { %1056 = vmatpush1.bf16.msra.mxu0 %v2030_v36 }
 0x159   : > { %1793 = vmatmul.mubr.msk.bf16.vlgmr.msra.gmra.mrb[16].mxu1 %vm689_vm2, %v2000_v46  ;;  %1377 = vmatprep.subr.bf16.mxu0 %v2034_v38  ;;  %v2047_v38 = vld [vmem:[%s2733_s5 + $0x50] ss:$8 sps:$4 sm:$0xff]  }
 0x15a   : > { %853 = vmatprep.mubr.bf16.mxu1 %v2121_v2  ;;  %1207 = vmatpush1.bf16.msra.mxu1 %v2005_v58 }
 0x15b   : > { %1208 = vmatprep.subr.bf16.mxu1 %v2121_v2 }
 0x15e   : > { %1209 = vmatpush1.bf16.msra.mxu1 %v2007_v59  ;;  %v2040_v59 = vld [vmem:[%s2733_s5 + $0x24] ss:$8 sps:$4 sm:$0xff]  }
 0x15f   : > { %1210 = vmatprep.subr.bf16.mxu1 %v2121_v2 }
 0x161   : > { %1794 = vmatmul.mubr.msk.bf16.gmra.mrb[20].mxu1 %vm689_vm2, %v2001_v9 }
 0x162   : > { %863 = vmatprep.mubr.bf16.mxu1 %v2121_v2  ;;  %1211 = vmatpush1.bf16.msra.mxu1 %v2009_v10 }
 0x163   : > { %1212 = vmatprep.subr.bf16.mxu1 %v2121_v2 }
 0x166   : > { %1213 = vmatpush1.bf16.msra.mxu1 %v2011_v13 }
 0x167   : > { %1214 = vmatprep.subr.bf16.mxu1 %v2121_v2 }
 0x169   : > { %1795 = vmatmul.mubr.msk.bf16.gmra.mrb[24].mxu1 %vm689_vm2, %v2002_v14  ;;  %v2038_v14 = vld [vmem:[%s2733_s5 + $0x20] ss:$8 sps:$4 sm:$0xff]  }
 0x16a   : > { %873 = vmatprep.mubr.bf16.mxu1 %v2121_v2  ;;  %1215 = vmatpush1.bf16.msra.mxu1 %v2013_v17 }
 0x16b   : > { %1216 = vmatprep.subr.bf16.mxu1 %v2121_v2 }
 0x16e   : > { %1217 = vmatpush1.bf16.msra.mxu1 %v2015_v19 }
 0x16f   : > { %1218 = vmatprep.subr.bf16.mxu1 %v2121_v2 }
 0x171   : > { %1796 = vmatmul.mubr.msk.bf16.gmra.mrb[28].mxu1 %vm689_vm2, %v2003_v15  ;;  %v2043_v15 = vld [vmem:[%s2733_s5 + $0x34] ss:$8 sps:$4 sm:$0xff]  }
 0x172   : > { %1219 = vmatpush1.bf16.msra.mxu1 %v2017_v21  ;;  %v2041_v21 = vld [vmem:[%s2733_s5 + $0x30] ss:$8 sps:$4 sm:$0xff]  }
 0x173   : > { %1220 = vmatprep.subr.bf16.mxu1 %v2121_v2 }
 0x176   : > { %1221 = vmatpush1.bf16.msra.mxu1 %v2019_v23 }
 0x177   : > { %1222 = vmatprep.subr.bf16.mxu1 %v2121_v2 }
 0x17a   : > { %1223 = vmatpush1.bf16.msra.mxu1 %v2021_v25 }
 0x17b   : > { %1224 = vmatprep.subr.bf16.mxu1 %v2121_v2 }
 0x17e   : > { %1225 = vmatpush1.bf16.msra.mxu1 %v2023_v27 }
 0x17f   : > { %1226 = vmatprep.subr.bf16.mxu1 %v2121_v2 }
 0x182   : > { %1227 = vmatpush1.bf16.msra.mxu1 %v2025_v31  ;;  %v2049_v31 = vld [vmem:[%s2733_s5 + $0x54] ss:$8 sps:$4 sm:$0xff]  }
 0x183   : > { %1228 = vmatprep.subr.bf16.mxu1 %v2121_v2 }
 0x186   : > { %1229 = vmatpush1.bf16.msra.mxu1 %v2027_v33 }
 0x187   : > { %1230 = vmatprep.subr.bf16.mxu1 %v2121_v2 }
 0x18a   : > { %1231 = vmatpush1.bf16.msra.mxu1 %v2029_v35 }
 0x18b   : > { %1232 = vmatprep.subr.bf16.mxu1 %v2121_v2 }
 0x18e   : > { %1233 = vmatpush1.bf16.msra.mxu1 %v2031_v37 }
 0x20c   : > { %v736_v39 = vpop.f32.mrb[0].mxu1 }
 0x20d   : > { %v738_v40 = vpop.f32.mrb[1].mxu1 }
 0x20e   : > { %v740_v41 = vpop.f32.mrb[2].mxu1 }
 0x20f   : > { %v742_v42 = vpop.f32.mrb[3].mxu1 }
 0x214   : > { %v746_v43 = vpop.f32.mrb[4].mxu1 }
 0x215   : > { %v748_v45 = vpop.f32.mrb[5].mxu1 }
 0x216   : > { %v750_v47 = vpop.f32.mrb[6].mxu1 }
 0x217   : > { %v752_v48 = vpop.f32.mrb[7].mxu1 }
 0x21c   : > { %v756_v49 = vpop.f32.mrb[8].mxu1 }
 0x21d   : > { %v758_v50 = vpop.f32.mrb[9].mxu1 }
 0x21e   : > { %v760_v51 = vpop.f32.mrb[10].mxu1 }
 0x21f   : > { %v762_v52 = vpop.f32.mrb[11].mxu1 }
 0x224   : > { %v2515_v53 = vpop.f32.mrb[12].mxu1 }
 0x225   : > { %v2517_v54 = vpop.f32.mrb[13].mxu1 }
 0x226   : > { %v770_v55 = vpop.f32.mrb[14].mxu1 }
 0x227   : > { %v771_v56 = vpop.f32.mrb[15].mxu1 }
 0x22c   : > { %v845_v57 = vpop.f32.mrb[16].mxu1 }
 0x22d   : > { %v882_v60 = vmax.f32 %v736_v39, %v845_v57  ;;  %v847_v61 = vpop.f32.mrb[17].mxu1 }
 0x22e   : > { %v883_v62 = vmax.f32 %v738_v40, %v847_v61  ;;  %v849_v63 = vpop.f32.mrb[18].mxu1 }
 0x22f   : > { %v884_v0 = vmax.f32 %v740_v41, %v849_v63  ;;  %v851_v1 = vpop.f32.mrb[19].mxu1  ;;  %v2052_v41 = vld [vmem:[%s2733_s5 + $0x64] ss:$8 sps:$4 sm:$0xff]  }
 0x230   : > { %v885_v3 = vmax.f32 %v742_v42, %v851_v1  ;;  %v2050_v42 = vld [vmem:[%s2733_s5 + $0x60] ss:$8 sps:$4 sm:$0xff]  }
 0x231   : > { %v896_v4 = vpack.c.bf16 %v884_v0, %v882_v60 }
 0x232   : > { %v897_v5 = vpack.c.bf16 %v885_v3, %v883_v62 }
 0x234   : > { %v855_v8 = vpop.f32.mrb[20].mxu1  ;;  %1811 = vmatprep.mubr.msk.bf16.mxu0 %vm1016_vm3, %v897_v5  ;;  %1857 = vmatprep.mubr.msk.bf16.mxu1 %vm1016_vm3, %v897_v5 }
 0x235   : > { %v886_v11 = vmax.f32 %v746_v43, %v855_v8  ;;  %v857_v12 = vpop.f32.mrb[21].mxu1  ;;  %1062 = vmatmul.mubr.bf16.vlgmr.msra.gmra.mrb[28].mxu0 %v896_v4  ;;  %1239 = vmatmul.mubr.bf16.vlgmr.msra.gmra.mrb[32].mxu1 %v896_v4 }
 0x236   : > { %v887_v29 = vmax.f32 %v748_v45, %v857_v12  ;;  %v859_v30 = vpop.f32.mrb[22].mxu1  ;;  %1378 = vmatpush1.bf16.msra.mxu0 %v2032_v6 }
 0x237   : > { %v888_v46 = vmax.f32 %v750_v47, %v859_v30  ;;  %v861_v58 = vpop.f32.mrb[23].mxu1  ;;  %1379 = vmatprep.subr.bf16.mxu0 %v2037_v7 }
 0x238   : > { %v889_v9 = vmax.f32 %v752_v48, %v861_v58 }
 0x239   : > { %v898_v10 = vpack.c.bf16 %v888_v46, %v886_v11 }
 0x23a   : > { %v899_v13 = vpack.c.bf16 %v889_v9, %v887_v29  ;;  %1380 = vmatpush1.bf16.msra.mxu0 %v2035_v44 }
 0x23b   : > { %1381 = vmatprep.subr.bf16.mxu0 %v2040_v59 }
 0x23c   : > { %v865_v16 = vpop.f32.mrb[24].mxu1  ;;  %1812 = vmatprep.mubr.msk.bf16.mxu0 %vm1016_vm3, %v899_v13  ;;  %1858 = vmatprep.mubr.msk.bf16.mxu1 %vm1016_vm3, %v899_v13 }
 0x23d   : > { %v890_v17 = vmax.f32 %v756_v49, %v865_v16  ;;  %v867_v18 = vpop.f32.mrb[25].mxu1  ;;  %1070 = vmatmul.mubr.bf16.gmra.mrb[32].mxu0 %v898_v10  ;;  %1247 = vmatmul.mubr.bf16.gmra.mrb[36].mxu1 %v898_v10 }
 0x23e   : > { %v891_v19 = vmax.f32 %v758_v50, %v867_v18  ;;  %v869_v20 = vpop.f32.mrb[26].mxu1  ;;  %1382 = vmatpush1.bf16.msra.mxu0 %v2038_v14 }
 0x23f   : > { %v892_v22 = vmax.f32 %v760_v51, %v869_v20  ;;  %v871_v23 = vpop.f32.mrb[27].mxu1  ;;  %1383 = vmatprep.subr.bf16.mxu0 %v2043_v15 }
 0x240   : > { %v893_v25 = vmax.f32 %v762_v52, %v871_v23  ;;  %v1554_v23 = vld [vmem:[%s2736_s8 + $0x10] sm:$0xff] }
 0x241   : > { %v900_v26 = vpack.c.bf16 %v892_v22, %v890_v17  ;;  %v1552_v22 = vld [vmem:[%s2736_s8] sm:$0xff] }
 0x242   : > { %v901_v27 = vpack.c.bf16 %v893_v25, %v891_v19  ;;  %1384 = vmatpush1.bf16.msra.mxu0 %v2041_v21  ;;  %v2122_v21 = vmov 0.0  }
 0x243   : > { %1385 = vmatprep.subr.bf16.mxu0 %v2046_v24  ;;  %v2123_v24 = vmov 0.0|0.0  }
 0x244   : > { %v875_v32 = vpop.f32.mrb[28].mxu1  ;;  %1813 = vmatprep.mubr.msk.bf16.mxu0 %vm1016_vm3, %v901_v27  ;;  %1859 = vmatprep.mubr.msk.bf16.mxu1 %vm1016_vm3, %v901_v27 }
 0x245   : > { %v894_v33 = vmax.f32 %v2515_v53, %v875_v32  ;;  %v877_v34 = vpop.f32.mrb[29].mxu1  ;;  %1078 = vmatmul.mubr.bf16.gmra.mrb[36].mxu0 %v900_v26  ;;  %1255 = vmatmul.mubr.bf16.gmra.mrb[40].mxu1 %v900_v26  ;;  %v1555_v26 = vld [vmem:[%s2736_s8 + $0x18] sm:$0xff] }
 0x246   : > { %v895_v35 = vmax.f32 %v2517_v54, %v877_v34  ;;  %v879_v36 = vpop.f32.mrb[30].mxu1  ;;  %1386 = vmatpush1.bf16.msra.mxu0 %v2044_v28  ;;  %1899 = vmatprep.subr.bf16.mxu1 %v2123_v24  ;;  %v1903_v27 = vpack.c.bf16 %v1555_v26, %v1554_v23  ;;  %v1556_v28 = vld [vmem:[%s2736_s8 + $0x20] sm:$0xff]  ;;  %v1559_v34 = vld [vmem:[%s2736_s8 + $0x38] sm:$0xff] }
 0x247   : > { %v880_v37 = vpop.f32.mrb[31].mxu1  ;;  %1387 = vmatprep.subr.bf16.mxu0 %v2049_v31  ;;  %v902_v40 = vpack.c.bf16 %v894_v33, %v894_v33  ;;  %v1557_v31 = vld [vmem:[%s2736_s8 + $0x28] sm:$0xff]  ;;  %v1558_v33 = vld [vmem:[%s2736_s8 + $0x30] sm:$0xff]  ;;  %v1560_v36 = vld [vmem:[%s2736_s8 + $0x40] sm:$0xff] }
 0x248   : > { %v903_v39 = vpack.c.bf16 %v895_v35, %v895_v35  ;;  %v1906_v32 = vpack.c.bf16 %v1557_v31, %v1556_v28  ;;  %v1909_v35 = vpack.c.bf16 %v1559_v34, %v1558_v33  ;;  %v1561_v37 = vld [vmem:[%s2736_s8 + $0x48] sm:$0xff]  ;;  %v1460_v26 = vld [vmem:[%s2734_s6 + $0x60] sm:$0xff] }
 0x249   : > { %v1476_v34 = vld [vmem:[%s2735_s7] sm:$0xf] }
 0x24a   : > { %1814 = vmatprep.mubr.msk.bf16.mxu0 %vm1016_vm3, %v903_v39  ;;  %1860 = vmatprep.mubr.msk.bf16.mxu1 %vm1016_vm3, %v903_v39  ;;  %v1562_v39 = vld [vmem:[%s2736_s8 + $0x50] sm:$0xff] }
 0x24b   : > { %1388 = vmatpush1.bf16.msra.mxu0 %v2047_v38  ;;  %v1912_v38 = vpack.c.bf16 %v1561_v37, %v1560_v36  ;;  %v1569_v36 = vld [vmem:[%s2736_s8 + $0x88] sm:$0xf] }
 0x24c   : > { %1389 = vmatprep.subr.bf16.mxu0 %v2052_v41 }
 0x24d   : > { %1086 = vmatmul.mubr.bf16.gmra.mrb[40].mxu0 %v902_v40  ;;  %1263 = vmatmul.mubr.bf16.gmra.mrb[44].mxu1 %v902_v40  ;;  %v1563_v40 = vld [vmem:[%s2736_s8 + $0x58] sm:$0xff] }
 0x24e   : > { %1409 = vmatprep.mubr.bf16.mxu0 %v2121_v2  ;;  %v1915_v41 = vpack.c.bf16 %v1563_v40, %v1562_v39  ;;  %v1880_v40 = vld [vmem:[%s2737_s9] ss:$0 sm:$0xff] }
 0x24f   : > { %1390 = vmatpush1.bf16.msra.mxu0 %v2050_v42  ;;  %v1564_v42 = vld [vmem:[%s2736_s8 + $0x60] sm:$0xff] }
 0x308   : > { %v1063_v43 = vpop.f32.mrb[28].mxu0  ;;  %v1240_v45 = vpop.f32.mrb[32].mxu1 }
 0x309   : > { %v1270_v47 = vmax.f32 %v1063_v43, %v1240_v45  ;;  %v1065_v48 = vpop.f32.mrb[29].mxu0  ;;  %v1242_v49 = vpop.f32.mrb[33].mxu1  ;;  %v1565_v43 = vld [vmem:[%s2736_s8 + $0x68] sm:$0xff] }
 0x30a   : > { %v1066_v50 = vpop.f32.mrb[30].mxu0  ;;  %v1243_v51 = vpop.f32.mrb[34].mxu1  ;;  %v1918_v45 = vpack.c.bf16 %v1565_v43, %v1564_v42  ;;  %v1567_v48 = vld [vmem:[%s2736_s8 + $0x78] sm:$0xff] }
 0x30b   : > { %v1271_v52 = vmax.f32 %v1066_v50, %v1243_v51  ;;  %v1068_v53 = vpop.f32.mrb[31].mxu0  ;;  %v1245_v54 = vpop.f32.mrb[35].mxu1  ;;  %v1448_v51 = vld [vmem:[%s2734_s6] sm:$0xff] }
 0x30c   : > { %v1449_v54 = vld [vmem:[%s2734_s6 + $0x8] sm:$0xff] }
 0x30d   : > { %v1277_v55 = vpack.c.bf16 %v1271_v52, %v1270_v47  ;;  %v1566_v47 = vld [vmem:[%s2736_s8 + $0x70] sm:$0xff] }
 0x30e   : > { %v1921_v49 = vpack.c.bf16 %v1567_v48, %v1566_v47  ;;  %v1450_v52 = vld [vmem:[%s2734_s6 + $0x10] sm:$0xff] }
 0x30f   : > { %1875 = vmatmul.mubr.msk.bf16.vlgmr.msra.gmra.mrb[44].mxu0 %vm689_vm2, %v1277_v55  ;;  %v1451_v55 = vld [vmem:[%s2734_s6 + $0x18] sm:$0xff] }
 0x310   : > { %v1071_v56 = vpop.f32.mrb[32].mxu0  ;;  %v1248_v57 = vpop.f32.mrb[36].mxu1  ;;  %1419 = vmatprep.mubr.bf16.mxu0 %v2121_v2 }
 0x311   : > { %v1272_v60 = vmax.f32 %v1071_v56, %v1248_v57  ;;  %v1073_v61 = vpop.f32.mrb[33].mxu0  ;;  %v1250_v62 = vpop.f32.mrb[37].mxu1 }
 0x312   : > { %v1074_v63 = vpop.f32.mrb[34].mxu0  ;;  %v1251_v0 = vpop.f32.mrb[38].mxu1 }
 0x313   : > { %v1273_v1 = vmax.f32 %v1074_v63, %v1251_v0  ;;  %v1076_v3 = vpop.f32.mrb[35].mxu0  ;;  %v1253_v4 = vpop.f32.mrb[39].mxu1 }
 0x314   : > { %v1452_v4 = vld [vmem:[%s2734_s6 + $0x20] sm:$0xff] }
 0x315   : > { %v1278_v5 = vpack.c.bf16 %v1273_v1, %v1272_v60 }
 0x317   : > { %1876 = vmatmul.mubr.msk.bf16.gmra.mrb[48].mxu0 %vm689_vm2, %v1278_v5  ;;  %v1454_v5 = vld [vmem:[%s2734_s6 + $0x30] sm:$0xff] }
 0x318   : > { %v1079_v6 = vpop.f32.mrb[36].mxu0  ;;  %v1256_v7 = vpop.f32.mrb[40].mxu1  ;;  %1429 = vmatprep.mubr.bf16.mxu0 %v2121_v2 }
 0x319   : > { %v1274_v8 = vmax.f32 %v1079_v6, %v1256_v7  ;;  %v1081_v11 = vpop.f32.mrb[37].mxu0  ;;  %v1258_v12 = vpop.f32.mrb[41].mxu1  ;;  %v1453_v7 = vld [vmem:[%s2734_s6 + $0x28] sm:$0xff] }
 0x31a   : > { %v1082_v29 = vpop.f32.mrb[38].mxu0  ;;  %v1259_v30 = vpop.f32.mrb[42].mxu1 }
 0x31b   : > { %v1275_v44 = vmax.f32 %v1082_v29, %v1259_v30  ;;  %v1084_v46 = vpop.f32.mrb[39].mxu0  ;;  %v1261_v58 = vpop.f32.mrb[43].mxu1 }
 0x31d   : > { %v1279_v59 = vpack.c.bf16 %v1275_v44, %v1274_v8  ;;  %v1455_v8 = vld [vmem:[%s2734_s6 + $0x38] sm:$0xff] }
 0x31f   : > { %1877 = vmatmul.mubr.msk.bf16.gmra.mrb[52].mxu0 %vm689_vm2, %v1279_v59 }
 0x320   : > { %v1087_v9 = vpop.f32.mrb[40].mxu0  ;;  %v1264_v10 = vpop.f32.mrb[44].mxu1  ;;  %1439 = vmatprep.mubr.bf16.mxu0 %v2121_v2  ;;  %v1553_v2 = vld [vmem:[%s2736_s8 + $0x8] sm:$0xff] }
 0x321   : > { %v1276_v13 = vmax.f32 %v1087_v9, %v1264_v10  ;;  %v1089_v14 = vpop.f32.mrb[41].mxu0  ;;  %v1266_v15 = vpop.f32.mrb[45].mxu1  ;;  %v1900_v25 = vpack.c.bf16 %v1553_v2, %v1552_v22  ;;  %v1456_v10 = vld [vmem:[%s2734_s6 + $0x40] sm:$0xff] }
 0x322   : > { %v1090_v16 = vpop.f32.mrb[42].mxu0  ;;  %v1267_v17 = vpop.f32.mrb[46].mxu1  ;;  %v1457_v15 = vld [vmem:[%s2734_s6 + $0x48] sm:$0xff] }
 0x323   : > { %v1091_v18 = vpop.f32.mrb[43].mxu0  ;;  %v1268_v19 = vpop.f32.mrb[47].mxu1  ;;  %v1280_v20 = vpack.c.bf16 %v1276_v13, %v1276_v13  ;;  %1901 = vmatpush1.bf16.msra.mxu1 %v1900_v25  ;;  %v1458_v13 = vld [vmem:[%s2734_s6 + $0x50] sm:$0xff]  ;;  %v1459_v16 = vld [vmem:[%s2734_s6 + $0x58] sm:$0xff] }
 0x324   : > { %1902 = vmatprep.subr.bf16.mxu1 %v2123_v24 }
 0x327   : > { %1878 = vmatmul.mubr.msk.bf16.gmra.mrb[56].mxu0 %vm689_vm2, %v1280_v20  ;;  %1904 = vmatpush1.bf16.msra.mxu1 %v1903_v27 }
 0x328   : > { %1545 = vmatprep.mubr.f32.mxu0 %v2122_v21  ;;  %1905 = vmatprep.subr.bf16.mxu1 %v2123_v24 }
 0x32b   : > { %1907 = vmatpush1.bf16.msra.mxu1 %v1906_v32 }
 0x32c   : > { %1908 = vmatprep.subr.bf16.mxu1 %v2123_v24 }
 0x32f   : > { %1910 = vmatpush1.bf16.msra.mxu1 %v1909_v35  ;;  %v1568_v35 = vld [vmem:[%s2736_s8 + $0x80] sm:$0xff] }
 0x330   : > { %1911 = vmatprep.subr.bf16.mxu1 %v2123_v24  ;;  %v1924_v37 = vpack.c.bf16 %v1569_v36, %v1568_v35 }
 0x333   : > { %1913 = vmatpush1.bf16.msra.mxu1 %v1912_v38 }
 0x334   : > { %1914 = vmatprep.subr.bf16.mxu1 %v2123_v24 }
 0x337   : > { %1916 = vmatpush1.bf16.msra.mxu1 %v1915_v41 }
 0x338   : > { %1917 = vmatprep.subr.bf16.mxu1 %v2123_v24 }
 0x33b   : > { %1919 = vmatpush1.bf16.msra.mxu1 %v1918_v45 }
 0x33c   : > { %1920 = vmatprep.subr.bf16.mxu1 %v2123_v24 }
 0x33f   : > { %1922 = vmatpush1.bf16.msra.mxu1 %v1921_v49 }
 0x340   : > { %1923 = vmatprep.subr.bf16.mxu1 %v2123_v24  ;;  %v1461_v24 = vld [vmem:[%s2734_s6 + $0x68] sm:$0xff] }
 0x343   : > { %1926 = vmatpush1.bf16.msk.msra.mxu1 %vm1925_vm7, %v1924_v37 }
 0x3e2   : > { %v1411_v50 = vpop.f32.mrb[44].mxu0 }
 0x3e3   : > { %v1413_v53 = vpop.f32.mrb[45].mxu0  ;;  %v1462_v57 = vmul.f32 %v1448_v51, %v1411_v50 }
 0x3e4   : > { %v1415_v56 = vpop.f32.mrb[46].mxu0  ;;  %v1463_v62 = vmul.f32 %v1449_v54, %v1413_v53 }
 0x3e5   : > { %v1464_v60 = vmul.f32 %v1450_v52, %v1415_v56  ;;  %v1417_v61 = vpop.f32.mrb[47].mxu0 }
 0x3e6   : > { %v1465_v63 = vmul.f32 %v1451_v55, %v1417_v61 }
 0x3e7   : > { %v1889_v0 = vpack.c.bf16 %v1464_v60, %v1462_v57 }
 0x3e8   : > { %v1887_v1 = vpack.c.bf16 %v1465_v63, %v1463_v62 }
 0x3ea   : > { %v1421_v3 = vpop.f32.mrb[48].mxu0  ;;  %1888 = vmatprep.subr.bf16.mxu0 %v1887_v1 }
 0x3eb   : > { %v1423_v6 = vpop.f32.mrb[49].mxu0  ;;  %1890 = vmatpush1.bf16.msra.mxu0 %v1889_v0  ;;  %v1466_v12 = vmul.f32 %v1452_v4, %v1421_v3 }
 0x3ec   : > { %v1425_v11 = vpop.f32.mrb[50].mxu0  ;;  %v1467_v44 = vmul.f32 %v1453_v7, %v1423_v6 }
 0x3ed   : > { %v1468_v29 = vmul.f32 %v1454_v5, %v1425_v11  ;;  %v1427_v30 = vpop.f32.mrb[51].mxu0 }
 0x3ee   : > { %v1469_v46 = vmul.f32 %v1455_v8, %v1427_v30 }
 0x3ef   : > { %v1893_v58 = vpack.c.bf16 %v1468_v29, %v1466_v12 }
 0x3f0   : > { %v1891_v59 = vpack.c.bf16 %v1469_v46, %v1467_v44 }
 0x3f2   : > { %v1431_v9 = vpop.f32.mrb[52].mxu0  ;;  %1892 = vmatprep.subr.bf16.mxu0 %v1891_v59 }
 0x3f3   : > { %v1433_v14 = vpop.f32.mrb[53].mxu0  ;;  %1894 = vmatpush1.bf16.msra.mxu0 %v1893_v58  ;;  %v1470_v18 = vmul.f32 %v1456_v10, %v1431_v9 }
 0x3f4   : > { %v1435_v17 = vpop.f32.mrb[54].mxu0  ;;  %v1471_v21 = vmul.f32 %v1457_v15, %v1433_v14 }
 0x3f5   : > { %v1472_v19 = vmul.f32 %v1458_v13, %v1435_v17  ;;  %v1437_v20 = vpop.f32.mrb[55].mxu0 }
 0x3f6   : > { %v1473_v22 = vmul.f32 %v1459_v16, %v1437_v20 }
 0x3f7   : > { %v1897_v2 = vpack.c.bf16 %v1472_v19, %v1470_v18 }
 0x3f8   : > { %v1895_v23 = vpack.c.bf16 %v1473_v22, %v1471_v21 }
 0x3fa   : > { %v1441_v25 = vpop.f32.mrb[56].mxu0  ;;  %1896 = vmatprep.subr.bf16.mxu0 %v1895_v23 }
 0x3fb   : > { %v1443_v27 = vpop.f32.mrb[57].mxu0  ;;  %1898 = vmatpush1.bf16.msra.mxu0 %v1897_v2  ;;  %v1474_v32 = vmul.f32 %v1460_v26, %v1441_v25 }
 0x3fc   : > { %v1475_v28 = vmul.f32 %v1461_v24, %v1443_v27  ;;  %v1445_v31 = vpop.f32.mrb[58].mxu0 }
 0x3fd   : > { %v1446_v33 = vpop.f32.mrb[59].mxu0 }
 0x3fe   : > { %1493 = vmatprep.subr.mxu0 %v1475_v28 }
 0x3ff   : > { %1494 = vmatpush1.msra.mxu0 %v1474_v32 }
 0x400   : > { %1879 = vmatmul.mubr.msk.f32.vlgmr.msra.gmra.mrb[60].mxu0 %vm1477_vm4, %v1476_v34 }
 0x4d3   : > { %v1547_v38 = vpop.f32.mrb[60].mxu0 }
 0x4d4   : > { %v1549_v39 = vpop.f32.mrb[61].mxu0 }
 0x4d5   : > { %1882 = vmatprep.mubr.msk.f32.mxu1 %vm1577_vm8, %v1549_v39 }
 0x4d6   : > { %1650 = vmatmul.mubr.f32.vlgmr.msra.gmra.mrb[48].mxu1 %v1547_v38 }
 0x5a9   : > { %v1651_v41 = vpop.f32.mrb[48].mxu1 }
 0x5aa   : > { %v1652_v42 = vadd.f32 %v1880_v40, %v1651_v41  ;;  %v1653_v43 = vpop.f32.mrb[49].mxu1 }
 0x5ac   : > { %v1656_v45 = vsel %vm1655_vm9, %v1652_v42, -inf }
 0x5ad   : > { %1657 = vmax.xlane.f32.xlu0 %v1656_v45 }
 0x63a   : > { %v1658_v47 = vpop.xlane.xlu0 %1657 }
 0x63b   : > { %v1659_v48 = vsub.f32 %v1652_v42, %v1658_v47 }
 0x63d   : > { %v1660_v49 = vmul.f32 1.442695, %v1659_v48 }
 0x63f   : > { %2053 = vpow2.f32 %v1660_v49 }
 0x649   : > { %v2054_v50 = vpop.eup %2053 }
 0x64a   : > { %v1662_v51 = vsel %vm1655_vm9, %v2054_v50, 0.0 }
 0x64b   : > { %1663 = vadd.xlane.f32.xlu0 %v1662_v51 }
 0x6d8   : > { %v1664_v52 = vpop.xlane.xlu0 %1663 }
 0x6d9   : > { %2055 = vrcp.f32 %v1664_v52 }
 0x6e3   : > { %v2056_v53 = vpop.eup %2055 }
 0x6e4   : > { %v1666_v54 = vmul.f32 %v2056_v53, %v2054_v50 }
 0x6e6   : > { %1667 = vst.msk [vmem:[%s352_s25] sm:$0xf] %vm1655_vm9, %v1666_v54 }
 0x6e7   : > { %2070 = shalt.err (!%p2067_p3)
}
 0x6e8   : > { %s2071_s20 = scalar_lea.hbm %s2685_s28, 64  ;;  %s2075_s25 = scalar_lea.hbm %s2738_s10, 128 }
 0x6e9   : > { %p2072_p4 = scmp.ne.s32.totalorder %s2685_s28, %s2071_s20  ;;  %p2076_p9 = scmp.lt.u32.totalorder %s2685_s28, %s2738_s10 }
 0x6ea   : > { %p2077_p10 = scmp.lt.u32.totalorder %s2075_s25, %s2071_s20  ;;  %p2079_p12 = scmp.lt.u32.totalorder %s2071_s20, %s2685_s28 }
 0x6eb   : > { %p2073_p7 = pnand %p2072_p4, %p2219_p5 }
 0x6ec   : > { %p2078_p11 = por %p2077_p10, %p2076_p9 }
 0x6ed   : > { %p2074_p8 = pneg %p2073_p7 }
 0x6ee   : > { %p2080_p13 = por %p2079_p12, %p2078_p11 }
 0x6f0   : > { %p2081_p0 = pnand %p2080_p13, %p2074_p8 }
 0x6f2   : > { %2084 = shalt.err (!%p2081_p0)
}
 0x6f3   : > { %1928 = dma.vmem_to_hbm [thread:$0]  (%p2219_p5), %s2687_s30, 64, %s2685_s28, %s1669_s22  }
 0x6f4 PF: > { %p1934_p1 = scmp.ge.s32.totalorder %s2119_s16, 2  ;;  %s1694_s29 = sand.u32 1, %s2107_s13  }
 0x6f5   : > { %s1695_s17 = scalar_lea.sflag [#allocation3], %s1694_s29 }
 0x6f6   : > { %p1931_p2 = pnand %p1934_p1, %p2223_p6 }
 0x6f8   : > { %2102 = dma.done.wait (!%p1931_p2), %s1695_s17, 64  }
 0x6f9   : > { %2104 = vsyncadd (!%p1931_p2), %s1695_s17, 4294967232  ;;  %s2742_s11 = sld [smem:[#allocation5_spill]]  ;;  %p20_p3 = scmp.ge.s32.totalorder %s2206_s19, 4  }
 0x6fa   : > { %s2743_s13 = smov %s2111_s14  ;;  %s2744_s14 = smov %s2115_s15 }
 0x6fb   : > { %s2746_s16 = smov %s2206_s19  ;;  %22 = sbr.rel (!%p20_p3) target bundleno = 3 (0x3), region = 97 }
 0x6ff   : > { %s2745_s15 = smov %s2742_s11 }
 0x702   :  { %1700 = vsyncpa [#allocation3], 1 }
 0x703   :  { %1702 = vsyncpa [#allocation3 + $0x1], 1 }

</bundles_post_ra>
